<compile_context>
chip_gen: v5e
topology: v5e:2x2
jax: 0.10.0
libtpu: 0.0.40
codegen_flags: <defaults>
</compile_context>

<pallas_src>
import functools
import math

import jax
import jax.numpy as jnp
from jax import lax
from jax.experimental import pallas as pl
from jax.experimental.pallas import tpu as pltpu


# ----------------------------------------------------------------------------
# Label definitions (mirroring the PyTorch script)
# ----------------------------------------------------------------------------
ENTITY_MAP = {'Other': 0, 'Peop': 1, 'Org': 2, 'Loc': 3}
LABEL_MAP = {0: 'O', 1: 'B-Other', 2: 'I-Other', 3: 'B-Peop', 4: 'I-Peop',
             5: 'B-Org', 6: 'I-Org', 7: 'B-Loc', 8: 'I-Loc'}
NUM_CHUNK = len(LABEL_MAP)      # dchunk_out = 9


# ----------------------------------------------------------------------------
# Pallas kernel: BiGRU + label-conditioned chunk decoder (single invocation)
# ----------------------------------------------------------------------------
def _classifier_kernel(S, B, d_h, C,
                       xw_ref, wihf_ref, bihf_ref, wihb_ref, bihb_ref,
                       whhf_ref, bhhf_ref, whhb_ref, bhhb_ref,
                       wch_ref, wce_ref, bc_ref, lemb_ref,
                       outh_ref, outc_ref):
    """All activations are time-major: row t*B + b <-> (timestep t, batch b)."""
    f32 = jnp.float32
    xw = xw_ref[...]                                                   # (S*B, 3*d_in)

    # --- GRU input projections: hoisted to 2 matmuls (one per direction) -------
    xproj_f = jnp.dot(xw, wihf_ref[...], preferred_element_type=f32) + bihf_ref[...]
    xproj_b = jnp.dot(xw, wihb_ref[...], preferred_element_type=f32) + bihb_ref[...]

    whh_f = whhf_ref[...]; bhh_f = bhhf_ref[...]
    whh_b = whhb_ref[...]; bhh_b = bhhb_ref[...]

    def gru_step(xg, h, whh, bhh):
        # PyTorch GRU gate order: [r | z | n]; b_ih folded into xg, b_hh into hg.
        hg = jnp.dot(h, whh, preferred_element_type=f32) + bhh         # (B, 3*d_h)
        r = jax.nn.sigmoid(xg[:, 0:d_h] + hg[:, 0:d_h])
        z = jax.nn.sigmoid(xg[:, d_h:2 * d_h] + hg[:, d_h:2 * d_h])
        n = jnp.tanh(xg[:, 2 * d_h:3 * d_h] + r * hg[:, 2 * d_h:3 * d_h])
        return (1.0 - z) * n + z * h

    # --- forward direction (statically unrolled; S is a small static constant) -
    h = jnp.zeros((B, d_h), f32)
    hs_fwd = []
    for t in range(S):
        h = gru_step(xproj_f[t * B:(t + 1) * B, :], h, whh_f, bhh_f)
        hs_fwd.append(h)

    # --- reverse direction ------------------------------------------------------
    h = jnp.zeros((B, d_h), f32)
    hs_bwd = [None] * S
    for i in range(S):
        t = S - 1 - i
        h = gru_step(xproj_b[t * B:(t + 1) * B, :], h, whh_b, bhh_b)
        hs_bwd[t] = h

    # hidden states stay in vregs; single full-block store for the (S*B, 2*d_h) output
    hcat = jnp.concatenate([jnp.concatenate(hs_fwd, axis=0),
                            jnp.concatenate(hs_bwd, axis=0)], axis=1)   # (S*B, 2*d_h)
    outh_ref[...] = hcat

    # --- label-conditioned chunk decoder ----------------------------------------
    # hidden-state part of chunk_out for ALL timesteps at once (1 matmul)
    hproj = jnp.dot(hcat, wch_ref[...], preferred_element_type=f32) + bc_ref[...]   # (S*B, C)
    # label-embedding contribution table: row i = chunk_out contribution of label i
    lab_proj = jnp.dot(lemb_ref[...], wce_ref[...], preferred_element_type=f32)     # (C+1, C)

    lane_c = lax.broadcasted_iota(jnp.int32, (B, C), 1)
    lane_c1 = lax.broadcasted_iota(jnp.int32, (B, C + 1), 1)
    big = jnp.int32(jnp.iinfo(jnp.int32).max)
    prev_onehot = (lane_c1 == C).astype(f32)        # first step uses label_emb[-1]

    logits_steps = []
    for t in range(S):
        logits = hproj[t * B:(t + 1) * B, :] + jnp.dot(
            prev_onehot, lab_proj, preferred_element_type=f32)          # (B, C)
        logits_steps.append(logits)
        # argmax(softmax(logits)) == argmax(logits); first-max tie-break like torch
        m = jnp.max(logits, axis=1, keepdims=True)
        amax = jnp.min(jnp.where(logits >= m, lane_c, big), axis=1, keepdims=True)
        prev_onehot = (lane_c1 == amax).astype(f32)  # next step's label_emb row (one-hot)

    # Softmax hoisted out of the sequential loop: one pass over all (S*B, C) logits,
    # one full-block store.
    lg = jnp.concatenate(logits_steps, axis=0)                          # (S*B, C)
    lg = lg - jnp.max(lg, axis=1, keepdims=True)
    e = jnp.exp(lg)
    outc_ref[...] = e / jnp.sum(e, axis=1, keepdims=True)


# ----------------------------------------------------------------------------
# Jitted entity path: window concat -> pallas kernel -> output transposes
# ----------------------------------------------------------------------------
@jax.jit
def _entity_path(params, X):
    B, S, d_in = X.shape
    d_h = params['whh_f'].shape[0]
    C = params['bc'].shape[1]

    # self.dropout(X): identity in eval mode.
    pad_rep = jnp.broadcast_to(params['pad'][None, :, :], (B, 1, d_in))
    X_pad = jnp.concatenate([pad_rep, X, pad_rep], axis=1)              # (B, S+2, d_in)
    xw = jnp.concatenate([X_pad[:, :-2, :], X_pad[:, 1:-1, :], X_pad[:, 2:, :]],
                         axis=2)                                        # (B, S, 3*d_in) = (l,m,r)
    # time-major rows for the kernel: row t*B + b
    xw2d = jnp.transpose(xw, (1, 0, 2)).reshape(S * B, 3 * d_in)

    kernel = functools.partial(_classifier_kernel, S, B, d_h, C)
    vmem = pl.BlockSpec(memory_space=pltpu.MemorySpace.VMEM)
    out_h2d, out_c2d = pl.pallas_call(
        kernel,
        out_shape=(jax.ShapeDtypeStruct((S * B, 2 * d_h), jnp.float32),
                   jax.ShapeDtypeStruct((S * B, C), jnp.float32)),
        in_specs=[vmem] * 13,
        out_specs=(vmem, vmem),
    )(xw2d,
      params['wih_f'], params['bih_f'], params['wih_b'], params['bih_b'],
      params['whh_f'], params['bhh_f'], params['whh_b'], params['bhh_b'],
      params['wch'], params['wce'], params['bc'], params['label_emb'])

    output_h = jnp.transpose(out_h2d.reshape(S, B, 2 * d_h), (1, 0, 2))     # (B, S, 2*d_h)
    output_chunk = jnp.transpose(out_c2d.reshape(S, B, C), (1, 0, 2)).reshape(B * S, C)
    return output_h, output_chunk


# ----------------------------------------------------------------------------
# Parameter init (mirrors the PyTorch module, stored in kernel-ready layouts)
# ----------------------------------------------------------------------------
def init_classifier_params(key, d_in, d_h, d_e, dchunk_out):
    ks = jax.random.split(key, 12)

    def u(k, shape, bound):
        return jax.random.uniform(k, shape, jnp.float32, -bound, bound)

    kgru = 1.0 / math.sqrt(d_h)                       # PyTorch GRU init U(-1/sqrt(H), 1/sqrt(H))
    params = {
        # self.pad : xavier_uniform (1, d_in)
        'pad': u(ks[0], (1, d_in), math.sqrt(6.0 / (1 + d_in))),
        # self.label_emb : xavier_uniform (dchunk_out+1, d_e)
        'label_emb': u(ks[1], (dchunk_out + 1, d_e),
                       math.sqrt(6.0 / ((dchunk_out + 1) + d_e))),
        # GRU forward direction (pre-transposed for x @ W layouts)
        'wih_f': u(ks[2], (3 * d_in, 3 * d_h), kgru),
        'whh_f': u(ks[3], (d_h, 3 * d_h), kgru),
        'bih_f': u(ks[4], (1, 3 * d_h), kgru),
        'bhh_f': u(ks[5], (1, 3 * d_h), kgru),
        # GRU reverse direction
        'wih_b': u(ks[6], (3 * d_in, 3 * d_h), kgru),
        'whh_b': u(ks[7], (d_h, 3 * d_h), kgru),
        'bih_b': u(ks[8], (1, 3 * d_h), kgru),
        'bhh_b': u(ks[9], (1, 3 * d_h), kgru),
    }
    # self.chunk_out : Linear(2*d_h + d_e, dchunk_out), split into hidden / label parts
    fan_in = 2 * d_h + d_e
    kc = 1.0 / math.sqrt(fan_in)
    wc = u(ks[10], (fan_in, dchunk_out), kc)
    params['wch'] = wc[:2 * d_h, :]                   # (2*d_h, C)
    params['wce'] = wc[2 * d_h:, :]                   # (d_e,   C)
    params['bc'] = u(ks[11], (1, dchunk_out), kc)
    # self.lstm / self.middle_rel / self.rel_out are unused on the entity path.
    return params


# ----------------------------------------------------------------------------
# Module wrapper
# ----------------------------------------------------------------------------
def classifier_forward(params, label_map, entity_map, epoch, X, attn, src_mask,
                       train_ent, entity=False, rel=False, train=False, train_rel=None):
    # TODO(synk): training-mode dropout / scheduled sampling not implemented (eval path only).
    output_h, output_chunk = _entity_path(params, X)

    if entity and (not rel):
        return output_h, output_chunk
    # TODO(synk): relation branch needs utils.schedule_sample /
    # utils.generate_candidate_entity_pair (external, data-dependent Python glue);
    # it has no clean Pallas equivalent, so only the entity outputs are returned.
    return output_h, output_chunk, {}


# ----------------------------------------------------------------------------
# Demo
# ----------------------------------------------------------------------------
if __name__ == "__main__":
    key = jax.random.PRNGKey(0)
    kp, kx = jax.random.split(key)

    B, S = 2, 8
    d_in, d_h, d_e = 32, 32, 8
    dchunk_out = NUM_CHUNK        # 9
    n_heads = 4

    params = init_classifier_params(kp, d_in, d_h, d_e, dchunk_out)

    X = jax.random.normal(kx, (B, S, d_in), jnp.float32)
    attn = jnp.zeros((B, n_heads, S, S), jnp.float32)     # unused on the entity path
    src_mask = jnp.ones((B, 1, S), jnp.float32)           # unused on the entity path

    output_h, output_chunk = classifier_forward(
        params, LABEL_MAP, ENTITY_MAP, epoch=0, X=X, attn=attn, src_mask=src_mask,
        train_ent=None, entity=True, rel=False, train=False, train_rel=None)

    output_h = jax.block_until_ready(output_h)
    output_chunk = jax.block_until_ready(output_chunk)

    assert output_h.shape == (B, S, 2 * d_h)
    assert output_chunk.shape == (B * S, dchunk_out)
    assert bool(jnp.isfinite(output_h).all())
    assert bool(jnp.isfinite(output_chunk).all())
    # each decoded chunk distribution must be a valid softmax
    assert bool(jnp.allclose(jnp.sum(output_chunk, axis=1), 1.0, atol=1e-5))

    print("KERNEL_OK")
</pallas_src>

<mosaic_0001>
module attributes {stable_mosaic.version = 11 : i64} {
  func.func @_classifier_kernel(%arg0: memref<16x96xf32, #tpu.memory_space<vmem>>, %arg1: memref<96x96xf32, #tpu.memory_space<vmem>>, %arg2: memref<1x96xf32, #tpu.memory_space<vmem>>, %arg3: memref<96x96xf32, #tpu.memory_space<vmem>>, %arg4: memref<1x96xf32, #tpu.memory_space<vmem>>, %arg5: memref<32x96xf32, #tpu.memory_space<vmem>>, %arg6: memref<1x96xf32, #tpu.memory_space<vmem>>, %arg7: memref<32x96xf32, #tpu.memory_space<vmem>>, %arg8: memref<1x96xf32, #tpu.memory_space<vmem>>, %arg9: memref<64x9xf32, #tpu.memory_space<vmem>>, %arg10: memref<8x9xf32, #tpu.memory_space<vmem>>, %arg11: memref<1x9xf32, #tpu.memory_space<vmem>>, %arg12: memref<10x8xf32, #tpu.memory_space<vmem>>, %arg13: memref<16x64xf32, #tpu.memory_space<vmem>>, %arg14: memref<16x9xf32, #tpu.memory_space<vmem>>) attributes {dimension_semantics = [], scalar_prefetch = 0 : i64, scratch_operands = 0 : i64, tpu.core_type = #tpu.core_type<tc>} {
    %c0 = arith.constant 0 : index
    %c0_0 = arith.constant 0 : index
    %0 = vector.load %arg0[%c0, %c0_0] : memref<16x96xf32, #tpu.memory_space<vmem>>, vector<16x96xf32>
    %c0_1 = arith.constant 0 : index
    %c0_2 = arith.constant 0 : index
    %1 = vector.load %arg1[%c0_1, %c0_2] : memref<96x96xf32, #tpu.memory_space<vmem>>, vector<96x96xf32>
    %cst = arith.constant dense<0.000000e+00> : vector<16x96xf32>
    %2 = tpu.matmul %0, %1, %cst {dimension_numbers = #tpu.dot_dimension_numbers<[1], [0], [0], [1], [0, 0, 1, 1], [], []>} : vector<16x96xf32>, vector<96x96xf32>, vector<16x96xf32> -> vector<16x96xf32>
    %c0_3 = arith.constant 0 : index
    %c0_4 = arith.constant 0 : index
    %3 = vector.load %arg2[%c0_3, %c0_4] : memref<1x96xf32, #tpu.memory_space<vmem>>, vector<1x96xf32>
    %4 = vector.broadcast %3 : vector<1x96xf32> to vector<16x96xf32>
    %5 = arith.addf %2, %4 : vector<16x96xf32>
    %c0_5 = arith.constant 0 : index
    %c0_6 = arith.constant 0 : index
    %6 = vector.load %arg3[%c0_5, %c0_6] : memref<96x96xf32, #tpu.memory_space<vmem>>, vector<96x96xf32>
    %cst_7 = arith.constant dense<0.000000e+00> : vector<16x96xf32>
    %7 = tpu.matmul %0, %6, %cst_7 {dimension_numbers = #tpu.dot_dimension_numbers<[1], [0], [0], [1], [0, 0, 1, 1], [], []>} : vector<16x96xf32>, vector<96x96xf32>, vector<16x96xf32> -> vector<16x96xf32>
    %c0_8 = arith.constant 0 : index
    %c0_9 = arith.constant 0 : index
    %8 = vector.load %arg4[%c0_8, %c0_9] : memref<1x96xf32, #tpu.memory_space<vmem>>, vector<1x96xf32>
    %9 = vector.broadcast %8 : vector<1x96xf32> to vector<16x96xf32>
    %10 = arith.addf %7, %9 : vector<16x96xf32>
    %c0_10 = arith.constant 0 : index
    %c0_11 = arith.constant 0 : index
    %11 = vector.load %arg5[%c0_10, %c0_11] : memref<32x96xf32, #tpu.memory_space<vmem>>, vector<32x96xf32>
    %c0_12 = arith.constant 0 : index
    %c0_13 = arith.constant 0 : index
    %12 = vector.load %arg6[%c0_12, %c0_13] : memref<1x96xf32, #tpu.memory_space<vmem>>, vector<1x96xf32>
    %c0_14 = arith.constant 0 : index
    %c0_15 = arith.constant 0 : index
    %13 = vector.load %arg7[%c0_14, %c0_15] : memref<32x96xf32, #tpu.memory_space<vmem>>, vector<32x96xf32>
    %c0_16 = arith.constant 0 : index
    %c0_17 = arith.constant 0 : index
    %14 = vector.load %arg8[%c0_16, %c0_17] : memref<1x96xf32, #tpu.memory_space<vmem>>, vector<1x96xf32>
    %cst_18 = arith.constant 0.000000e+00 : f32
    %15 = vector.broadcast %cst_18 : f32 to vector<2x32xf32>
    %16 = vector.extract_strided_slice %5 {offsets = [0, 0], sizes = [2, 96], strides = [1, 1]} : vector<16x96xf32> to vector<2x96xf32>
    %cst_19 = arith.constant dense<0.000000e+00> : vector<2x96xf32>
    %17 = tpu.matmul %15, %11, %cst_19 {dimension_numbers = #tpu.dot_dimension_numbers<[1], [0], [0], [1], [0, 0, 1, 1], [], []>} : vector<2x32xf32>, vector<32x96xf32>, vector<2x96xf32> -> vector<2x96xf32>
    %18 = vector.broadcast %12 : vector<1x96xf32> to vector<2x96xf32>
    %19 = arith.addf %17, %18 : vector<2x96xf32>
    %20 = vector.extract_strided_slice %16 {offsets = [0, 0], sizes = [2, 32], strides = [1, 1]} : vector<2x96xf32> to vector<2x32xf32>
    %21 = vector.extract_strided_slice %19 {offsets = [0, 0], sizes = [2, 32], strides = [1, 1]} : vector<2x96xf32> to vector<2x32xf32>
    %22 = arith.addf %20, %21 : vector<2x32xf32>
    %23 = arith.negf %22 : vector<2x32xf32>
    %24 = math.exp %23 : vector<2x32xf32>
    %cst_20 = arith.constant 1.000000e+00 : f32
    %25 = vector.broadcast %cst_20 : f32 to vector<2x32xf32>
    %26 = arith.addf %25, %24 : vector<2x32xf32>
    %27 = arith.divf %25, %26 : vector<2x32xf32>
    %28 = vector.extract_strided_slice %16 {offsets = [0, 32], sizes = [2, 32], strides = [1, 1]} : vector<2x96xf32> to vector<2x32xf32>
    %29 = vector.extract_strided_slice %19 {offsets = [0, 32], sizes = [2, 32], strides = [1, 1]} : vector<2x96xf32> to vector<2x32xf32>
    %30 = arith.addf %28, %29 : vector<2x32xf32>
    %31 = arith.negf %30 : vector<2x32xf32>
    %32 = math.exp %31 : vector<2x32xf32>
    %cst_21 = arith.constant 1.000000e+00 : f32
    %33 = vector.broadcast %cst_21 : f32 to vector<2x32xf32>
    %34 = arith.addf %33, %32 : vector<2x32xf32>
    %35 = arith.divf %33, %34 : vector<2x32xf32>
    %36 = vector.extract_strided_slice %16 {offsets = [0, 64], sizes = [2, 32], strides = [1, 1]} : vector<2x96xf32> to vector<2x32xf32>
    %37 = vector.extract_strided_slice %19 {offsets = [0, 64], sizes = [2, 32], strides = [1, 1]} : vector<2x96xf32> to vector<2x32xf32>
    %38 = arith.mulf %27, %37 : vector<2x32xf32>
    %39 = arith.addf %36, %38 : vector<2x32xf32>
    %40 = math.tanh %39 : vector<2x32xf32>
    %cst_22 = arith.constant 1.000000e+00 : f32
    %41 = vector.broadcast %cst_22 : f32 to vector<2x32xf32>
    %42 = arith.subf %41, %35 : vector<2x32xf32>
    %43 = arith.mulf %42, %40 : vector<2x32xf32>
    %44 = arith.mulf %35, %15 : vector<2x32xf32>
    %45 = arith.addf %43, %44 : vector<2x32xf32>
    %46 = vector.extract_strided_slice %5 {offsets = [2, 0], sizes = [2, 96], strides = [1, 1]} : vector<16x96xf32> to vector<2x96xf32>
    %cst_23 = arith.constant dense<0.000000e+00> : vector<2x96xf32>
    %47 = tpu.matmul %45, %11, %cst_23 {dimension_numbers = #tpu.dot_dimension_numbers<[1], [0], [0], [1], [0, 0, 1, 1], [], []>} : vector<2x32xf32>, vector<32x96xf32>, vector<2x96xf32> -> vector<2x96xf32>
    %48 = vector.broadcast %12 : vector<1x96xf32> to vector<2x96xf32>
    %49 = arith.addf %47, %48 : vector<2x96xf32>
    %50 = vector.extract_strided_slice %46 {offsets = [0, 0], sizes = [2, 32], strides = [1, 1]} : vector<2x96xf32> to vector<2x32xf32>
    %51 = vector.extract_strided_slice %49 {offsets = [0, 0], sizes = [2, 32], strides = [1, 1]} : vector<2x96xf32> to vector<2x32xf32>
    %52 = arith.addf %50, %51 : vector<2x32xf32>
    %53 = arith.negf %52 : vector<2x32xf32>
    %54 = math.exp %53 : vector<2x32xf32>
    %cst_24 = arith.constant 1.000000e+00 : f32
    %55 = vector.broadcast %cst_24 : f32 to vector<2x32xf32>
    %56 = arith.addf %55, %54 : vector<2x32xf32>
    %57 = arith.divf %55, %56 : vector<2x32xf32>
    %58 = vector.extract_strided_slice %46 {offsets = [0, 32], sizes = [2, 32], strides = [1, 1]} : vector<2x96xf32> to vector<2x32xf32>
    %59 = vector.extract_strided_slice %49 {offsets = [0, 32], sizes = [2, 32], strides = [1, 1]} : vector<2x96xf32> to vector<2x32xf32>
    %60 = arith.addf %58, %59 : vector<2x32xf32>
    %61 = arith.negf %60 : vector<2x32xf32>
    %62 = math.exp %61 : vector<2x32xf32>
    %cst_25 = arith.constant 1.000000e+00 : f32
    %63 = vector.broadcast %cst_25 : f32 to vector<2x32xf32>
    %64 = arith.addf %63, %62 : vector<2x32xf32>
    %65 = arith.divf %63, %64 : vector<2x32xf32>
    %66 = vector.extract_strided_slice %46 {offsets = [0, 64], sizes = [2, 32], strides = [1, 1]} : vector<2x96xf32> to vector<2x32xf32>
    %67 = vector.extract_strided_slice %49 {offsets = [0, 64], sizes = [2, 32], strides = [1, 1]} : vector<2x96xf32> to vector<2x32xf32>
    %68 = arith.mulf %57, %67 : vector<2x32xf32>
    %69 = arith.addf %66, %68 : vector<2x32xf32>
    %70 = math.tanh %69 : vector<2x32xf32>
    %cst_26 = arith.constant 1.000000e+00 : f32
    %71 = vector.broadcast %cst_26 : f32 to vector<2x32xf32>
    %72 = arith.subf %71, %65 : vector<2x32xf32>
    %73 = arith.mulf %72, %70 : vector<2x32xf32>
    %74 = arith.mulf %65, %45 : vector<2x32xf32>
    %75 = arith.addf %73, %74 : vector<2x32xf32>
    %76 = vector.extract_strided_slice %5 {offsets = [4, 0], sizes = [2, 96], strides = [1, 1]} : vector<16x96xf32> to vector<2x96xf32>
    %cst_27 = arith.constant dense<0.000000e+00> : vector<2x96xf32>
    %77 = tpu.matmul %75, %11, %cst_27 {dimension_numbers = #tpu.dot_dimension_numbers<[1], [0], [0], [1], [0, 0, 1, 1], [], []>} : vector<2x32xf32>, vector<32x96xf32>, vector<2x96xf32> -> vector<2x96xf32>
    %78 = vector.broadcast %12 : vector<1x96xf32> to vector<2x96xf32>
    %79 = arith.addf %77, %78 : vector<2x96xf32>
    %80 = vector.extract_strided_slice %76 {offsets = [0, 0], sizes = [2, 32], strides = [1, 1]} : vector<2x96xf32> to vector<2x32xf32>
    %81 = vector.extract_strided_slice %79 {offsets = [0, 0], sizes = [2, 32], strides = [1, 1]} : vector<2x96xf32> to vector<2x32xf32>
    %82 = arith.addf %80, %81 : vector<2x32xf32>
    %83 = arith.negf %82 : vector<2x32xf32>
    %84 = math.exp %83 : vector<2x32xf32>
    %cst_28 = arith.constant 1.000000e+00 : f32
    %85 = vector.broadcast %cst_28 : f32 to vector<2x32xf32>
    %86 = arith.addf %85, %84 : vector<2x32xf32>
    %87 = arith.divf %85, %86 : vector<2x32xf32>
    %88 = vector.extract_strided_slice %76 {offsets = [0, 32], sizes = [2, 32], strides = [1, 1]} : vector<2x96xf32> to vector<2x32xf32>
    %89 = vector.extract_strided_slice %79 {offsets = [0, 32], sizes = [2, 32], strides = [1, 1]} : vector<2x96xf32> to vector<2x32xf32>
    %90 = arith.addf %88, %89 : vector<2x32xf32>
    %91 = arith.negf %90 : vector<2x32xf32>
    %92 = math.exp %91 : vector<2x32xf32>
    %cst_29 = arith.constant 1.000000e+00 : f32
    %93 = vector.broadcast %cst_29 : f32 to vector<2x32xf32>
    %94 = arith.addf %93, %92 : vector<2x32xf32>
    %95 = arith.divf %93, %94 : vector<2x32xf32>
    %96 = vector.extract_strided_slice %76 {offsets = [0, 64], sizes = [2, 32], strides = [1, 1]} : vector<2x96xf32> to vector<2x32xf32>
    %97 = vector.extract_strided_slice %79 {offsets = [0, 64], sizes = [2, 32], strides = [1, 1]} : vector<2x96xf32> to vector<2x32xf32>
    %98 = arith.mulf %87, %97 : vector<2x32xf32>
    %99 = arith.addf %96, %98 : vector<2x32xf32>
    %100 = math.tanh %99 : vector<2x32xf32>
    %cst_30 = arith.constant 1.000000e+00 : f32
    %101 = vector.broadcast %cst_30 : f32 to vector<2x32xf32>
    %102 = arith.subf %101, %95 : vector<2x32xf32>
    %103 = arith.mulf %102, %100 : vector<2x32xf32>
    %104 = arith.mulf %95, %75 : vector<2x32xf32>
    %105 = arith.addf %103, %104 : vector<2x32xf32>
    %106 = vector.extract_strided_slice %5 {offsets = [6, 0], sizes = [2, 96], strides = [1, 1]} : vector<16x96xf32> to vector<2x96xf32>
    %cst_31 = arith.constant dense<0.000000e+00> : vector<2x96xf32>
    %107 = tpu.matmul %105, %11, %cst_31 {dimension_numbers = #tpu.dot_dimension_numbers<[1], [0], [0], [1], [0, 0, 1, 1], [], []>} : vector<2x32xf32>, vector<32x96xf32>, vector<2x96xf32> -> vector<2x96xf32>
    %108 = vector.broadcast %12 : vector<1x96xf32> to vector<2x96xf32>
    %109 = arith.addf %107, %108 : vector<2x96xf32>
    %110 = vector.extract_strided_slice %106 {offsets = [0, 0], sizes = [2, 32], strides = [1, 1]} : vector<2x96xf32> to vector<2x32xf32>
    %111 = vector.extract_strided_slice %109 {offsets = [0, 0], sizes = [2, 32], strides = [1, 1]} : vector<2x96xf32> to vector<2x32xf32>
    %112 = arith.addf %110, %111 : vector<2x32xf32>
    %113 = arith.negf %112 : vector<2x32xf32>
    %114 = math.exp %113 : vector<2x32xf32>
    %cst_32 = arith.constant 1.000000e+00 : f32
    %115 = vector.broadcast %cst_32 : f32 to vector<2x32xf32>
    %116 = arith.addf %115, %114 : vector<2x32xf32>
    %117 = arith.divf %115, %116 : vector<2x32xf32>
    %118 = vector.extract_strided_slice %106 {offsets = [0, 32], sizes = [2, 32], strides = [1, 1]} : vector<2x96xf32> to vector<2x32xf32>
    %119 = vector.extract_strided_slice %109 {offsets = [0, 32], sizes = [2, 32], strides = [1, 1]} : vector<2x96xf32> to vector<2x32xf32>
    %120 = arith.addf %118, %119 : vector<2x32xf32>
    %121 = arith.negf %120 : vector<2x32xf32>
    %122 = math.exp %121 : vector<2x32xf32>
    %cst_33 = arith.constant 1.000000e+00 : f32
    %123 = vector.broadcast %cst_33 : f32 to vector<2x32xf32>
    %124 = arith.addf %123, %122 : vector<2x32xf32>
    %125 = arith.divf %123, %124 : vector<2x32xf32>
    %126 = vector.extract_strided_slice %106 {offsets = [0, 64], sizes = [2, 32], strides = [1, 1]} : vector<2x96xf32> to vector<2x32xf32>
    %127 = vector.extract_strided_slice %109 {offsets = [0, 64], sizes = [2, 32], strides = [1, 1]} : vector<2x96xf32> to vector<2x32xf32>
    %128 = arith.mulf %117, %127 : vector<2x32xf32>
    %129 = arith.addf %126, %128 : vector<2x32xf32>
    %130 = math.tanh %129 : vector<2x32xf32>
    %cst_34 = arith.constant 1.000000e+00 : f32
    %131 = vector.broadcast %cst_34 : f32 to vector<2x32xf32>
    %132 = arith.subf %131, %125 : vector<2x32xf32>
    %133 = arith.mulf %132, %130 : vector<2x32xf32>
    %134 = arith.mulf %125, %105 : vector<2x32xf32>
    %135 = arith.addf %133, %134 : vector<2x32xf32>
    %136 = vector.extract_strided_slice %5 {offsets = [8, 0], sizes = [2, 96], strides = [1, 1]} : vector<16x96xf32> to vector<2x96xf32>
    %cst_35 = arith.constant dense<0.000000e+00> : vector<2x96xf32>
    %137 = tpu.matmul %135, %11, %cst_35 {dimension_numbers = #tpu.dot_dimension_numbers<[1], [0], [0], [1], [0, 0, 1, 1], [], []>} : vector<2x32xf32>, vector<32x96xf32>, vector<2x96xf32> -> vector<2x96xf32>
    %138 = vector.broadcast %12 : vector<1x96xf32> to vector<2x96xf32>
    %139 = arith.addf %137, %138 : vector<2x96xf32>
    %140 = vector.extract_strided_slice %136 {offsets = [0, 0], sizes = [2, 32], strides = [1, 1]} : vector<2x96xf32> to vector<2x32xf32>
    %141 = vector.extract_strided_slice %139 {offsets = [0, 0], sizes = [2, 32], strides = [1, 1]} : vector<2x96xf32> to vector<2x32xf32>
    %142 = arith.addf %140, %141 : vector<2x32xf32>
    %143 = arith.negf %142 : vector<2x32xf32>
    %144 = math.exp %143 : vector<2x32xf32>
    %cst_36 = arith.constant 1.000000e+00 : f32
    %145 = vector.broadcast %cst_36 : f32 to vector<2x32xf32>
    %146 = arith.addf %145, %144 : vector<2x32xf32>
    %147 = arith.divf %145, %146 : vector<2x32xf32>
    %148 = vector.extract_strided_slice %136 {offsets = [0, 32], sizes = [2, 32], strides = [1, 1]} : vector<2x96xf32> to vector<2x32xf32>
    %149 = vector.extract_strided_slice %139 {offsets = [0, 32], sizes = [2, 32], strides = [1, 1]} : vector<2x96xf32> to vector<2x32xf32>
    %150 = arith.addf %148, %149 : vector<2x32xf32>
    %151 = arith.negf %150 : vector<2x32xf32>
    %152 = math.exp %151 : vector<2x32xf32>
    %cst_37 = arith.constant 1.000000e+00 : f32
    %153 = vector.broadcast %cst_37 : f32 to vector<2x32xf32>
    %154 = arith.addf %153, %152 : vector<2x32xf32>
    %155 = arith.divf %153, %154 : vector<2x32xf32>
    %156 = vector.extract_strided_slice %136 {offsets = [0, 64], sizes = [2, 32], strides = [1, 1]} : vector<2x96xf32> to vector<2x32xf32>
    %157 = vector.extract_strided_slice %139 {offsets = [0, 64], sizes = [2, 32], strides = [1, 1]} : vector<2x96xf32> to vector<2x32xf32>
    %158 = arith.mulf %147, %157 : vector<2x32xf32>
    %159 = arith.addf %156, %158 : vector<2x32xf32>
    %160 = math.tanh %159 : vector<2x32xf32>
    %cst_38 = arith.constant 1.000000e+00 : f32
    %161 = vector.broadcast %cst_38 : f32 to vector<2x32xf32>
    %162 = arith.subf %161, %155 : vector<2x32xf32>
    %163 = arith.mulf %162, %160 : vector<2x32xf32>
    %164 = arith.mulf %155, %135 : vector<2x32xf32>
    %165 = arith.addf %163, %164 : vector<2x32xf32>
    %166 = vector.extract_strided_slice %5 {offsets = [10, 0], sizes = [2, 96], strides = [1, 1]} : vector<16x96xf32> to vector<2x96xf32>
    %cst_39 = arith.constant dense<0.000000e+00> : vector<2x96xf32>
    %167 = tpu.matmul %165, %11, %cst_39 {dimension_numbers = #tpu.dot_dimension_numbers<[1], [0], [0], [1], [0, 0, 1, 1], [], []>} : vector<2x32xf32>, vector<32x96xf32>, vector<2x96xf32> -> vector<2x96xf32>
    %168 = vector.broadcast %12 : vector<1x96xf32> to vector<2x96xf32>
    %169 = arith.addf %167, %168 : vector<2x96xf32>
    %170 = vector.extract_strided_slice %166 {offsets = [0, 0], sizes = [2, 32], strides = [1, 1]} : vector<2x96xf32> to vector<2x32xf32>
    %171 = vector.extract_strided_slice %169 {offsets = [0, 0], sizes = [2, 32], strides = [1, 1]} : vector<2x96xf32> to vector<2x32xf32>
    %172 = arith.addf %170, %171 : vector<2x32xf32>
    %173 = arith.negf %172 : vector<2x32xf32>
    %174 = math.exp %173 : vector<2x32xf32>
    %cst_40 = arith.constant 1.000000e+00 : f32
    %175 = vector.broadcast %cst_40 : f32 to vector<2x32xf32>
    %176 = arith.addf %175, %174 : vector<2x32xf32>
    %177 = arith.divf %175, %176 : vector<2x32xf32>
    %178 = vector.extract_strided_slice %166 {offsets = [0, 32], sizes = [2, 32], strides = [1, 1]} : vector<2x96xf32> to vector<2x32xf32>
    %179 = vector.extract_strided_slice %169 {offsets = [0, 32], sizes = [2, 32], strides = [1, 1]} : vector<2x96xf32> to vector<2x32xf32>
    %180 = arith.addf %178, %179 : vector<2x32xf32>
    %181 = arith.negf %180 : vector<2x32xf32>
    %182 = math.exp %181 : vector<2x32xf32>
    %cst_41 = arith.constant 1.000000e+00 : f32
    %183 = vector.broadcast %cst_41 : f32 to vector<2x32xf32>
    %184 = arith.addf %183, %182 : vector<2x32xf32>
    %185 = arith.divf %183, %184 : vector<2x32xf32>
    %186 = vector.extract_strided_slice %166 {offsets = [0, 64], sizes = [2, 32], strides = [1, 1]} : vector<2x96xf32> to vector<2x32xf32>
    %187 = vector.extract_strided_slice %169 {offsets = [0, 64], sizes = [2, 32], strides = [1, 1]} : vector<2x96xf32> to vector<2x32xf32>
    %188 = arith.mulf %177, %187 : vector<2x32xf32>
    %189 = arith.addf %186, %188 : vector<2x32xf32>
    %190 = math.tanh %189 : vector<2x32xf32>
    %cst_42 = arith.constant 1.000000e+00 : f32
    %191 = vector.broadcast %cst_42 : f32 to vector<2x32xf32>
    %192 = arith.subf %191, %185 : vector<2x32xf32>
    %193 = arith.mulf %192, %190 : vector<2x32xf32>
    %194 = arith.mulf %185, %165 : vector<2x32xf32>
    %195 = arith.addf %193, %194 : vector<2x32xf32>
    %196 = vector.extract_strided_slice %5 {offsets = [12, 0], sizes = [2, 96], strides = [1, 1]} : vector<16x96xf32> to vector<2x96xf32>
    %cst_43 = arith.constant dense<0.000000e+00> : vector<2x96xf32>
    %197 = tpu.matmul %195, %11, %cst_43 {dimension_numbers = #tpu.dot_dimension_numbers<[1], [0], [0], [1], [0, 0, 1, 1], [], []>} : vector<2x32xf32>, vector<32x96xf32>, vector<2x96xf32> -> vector<2x96xf32>
    %198 = vector.broadcast %12 : vector<1x96xf32> to vector<2x96xf32>
    %199 = arith.addf %197, %198 : vector<2x96xf32>
    %200 = vector.extract_strided_slice %196 {offsets = [0, 0], sizes = [2, 32], strides = [1, 1]} : vector<2x96xf32> to vector<2x32xf32>
    %201 = vector.extract_strided_slice %199 {offsets = [0, 0], sizes = [2, 32], strides = [1, 1]} : vector<2x96xf32> to vector<2x32xf32>
    %202 = arith.addf %200, %201 : vector<2x32xf32>
    %203 = arith.negf %202 : vector<2x32xf32>
    %204 = math.exp %203 : vector<2x32xf32>
    %cst_44 = arith.constant 1.000000e+00 : f32
    %205 = vector.broadcast %cst_44 : f32 to vector<2x32xf32>
    %206 = arith.addf %205, %204 : vector<2x32xf32>
    %207 = arith.divf %205, %206 : vector<2x32xf32>
    %208 = vector.extract_strided_slice %196 {offsets = [0, 32], sizes = [2, 32], strides = [1, 1]} : vector<2x96xf32> to vector<2x32xf32>
    %209 = vector.extract_strided_slice %199 {offsets = [0, 32], sizes = [2, 32], strides = [1, 1]} : vector<2x96xf32> to vector<2x32xf32>
    %210 = arith.addf %208, %209 : vector<2x32xf32>
    %211 = arith.negf %210 : vector<2x32xf32>
    %212 = math.exp %211 : vector<2x32xf32>
    %cst_45 = arith.constant 1.000000e+00 : f32
    %213 = vector.broadcast %cst_45 : f32 to vector<2x32xf32>
    %214 = arith.addf %213, %212 : vector<2x32xf32>
    %215 = arith.divf %213, %214 : vector<2x32xf32>
    %216 = vector.extract_strided_slice %196 {offsets = [0, 64], sizes = [2, 32], strides = [1, 1]} : vector<2x96xf32> to vector<2x32xf32>
    %217 = vector.extract_strided_slice %199 {offsets = [0, 64], sizes = [2, 32], strides = [1, 1]} : vector<2x96xf32> to vector<2x32xf32>
    %218 = arith.mulf %207, %217 : vector<2x32xf32>
    %219 = arith.addf %216, %218 : vector<2x32xf32>
    %220 = math.tanh %219 : vector<2x32xf32>
    %cst_46 = arith.constant 1.000000e+00 : f32
    %221 = vector.broadcast %cst_46 : f32 to vector<2x32xf32>
    %222 = arith.subf %221, %215 : vector<2x32xf32>
    %223 = arith.mulf %222, %220 : vector<2x32xf32>
    %224 = arith.mulf %215, %195 : vector<2x32xf32>
    %225 = arith.addf %223, %224 : vector<2x32xf32>
    %226 = vector.extract_strided_slice %5 {offsets = [14, 0], sizes = [2, 96], strides = [1, 1]} : vector<16x96xf32> to vector<2x96xf32>
    %cst_47 = arith.constant dense<0.000000e+00> : vector<2x96xf32>
    %227 = tpu.matmul %225, %11, %cst_47 {dimension_numbers = #tpu.dot_dimension_numbers<[1], [0], [0], [1], [0, 0, 1, 1], [], []>} : vector<2x32xf32>, vector<32x96xf32>, vector<2x96xf32> -> vector<2x96xf32>
    %228 = vector.broadcast %12 : vector<1x96xf32> to vector<2x96xf32>
    %229 = arith.addf %227, %228 : vector<2x96xf32>
    %230 = vector.extract_strided_slice %226 {offsets = [0, 0], sizes = [2, 32], strides = [1, 1]} : vector<2x96xf32> to vector<2x32xf32>
    %231 = vector.extract_strided_slice %229 {offsets = [0, 0], sizes = [2, 32], strides = [1, 1]} : vector<2x96xf32> to vector<2x32xf32>
    %232 = arith.addf %230, %231 : vector<2x32xf32>
    %233 = arith.negf %232 : vector<2x32xf32>
    %234 = math.exp %233 : vector<2x32xf32>
    %cst_48 = arith.constant 1.000000e+00 : f32
    %235 = vector.broadcast %cst_48 : f32 to vector<2x32xf32>
    %236 = arith.addf %235, %234 : vector<2x32xf32>
    %237 = arith.divf %235, %236 : vector<2x32xf32>
    %238 = vector.extract_strided_slice %226 {offsets = [0, 32], sizes = [2, 32], strides = [1, 1]} : vector<2x96xf32> to vector<2x32xf32>
    %239 = vector.extract_strided_slice %229 {offsets = [0, 32], sizes = [2, 32], strides = [1, 1]} : vector<2x96xf32> to vector<2x32xf32>
    %240 = arith.addf %238, %239 : vector<2x32xf32>
    %241 = arith.negf %240 : vector<2x32xf32>
    %242 = math.exp %241 : vector<2x32xf32>
    %cst_49 = arith.constant 1.000000e+00 : f32
    %243 = vector.broadcast %cst_49 : f32 to vector<2x32xf32>
    %244 = arith.addf %243, %242 : vector<2x32xf32>
    %245 = arith.divf %243, %244 : vector<2x32xf32>
    %246 = vector.extract_strided_slice %226 {offsets = [0, 64], sizes = [2, 32], strides = [1, 1]} : vector<2x96xf32> to vector<2x32xf32>
    %247 = vector.extract_strided_slice %229 {offsets = [0, 64], sizes = [2, 32], strides = [1, 1]} : vector<2x96xf32> to vector<2x32xf32>
    %248 = arith.mulf %237, %247 : vector<2x32xf32>
    %249 = arith.addf %246, %248 : vector<2x32xf32>
    %250 = math.tanh %249 : vector<2x32xf32>
    %cst_50 = arith.constant 1.000000e+00 : f32
    %251 = vector.broadcast %cst_50 : f32 to vector<2x32xf32>
    %252 = arith.subf %251, %245 : vector<2x32xf32>
    %253 = arith.mulf %252, %250 : vector<2x32xf32>
    %254 = arith.mulf %245, %225 : vector<2x32xf32>
    %255 = arith.addf %253, %254 : vector<2x32xf32>
    %cst_51 = arith.constant 0.000000e+00 : f32
    %256 = vector.broadcast %cst_51 : f32 to vector<2x32xf32>
    %257 = vector.extract_strided_slice %10 {offsets = [14, 0], sizes = [2, 96], strides = [1, 1]} : vector<16x96xf32> to vector<2x96xf32>
    %cst_52 = arith.constant dense<0.000000e+00> : vector<2x96xf32>
    %258 = tpu.matmul %256, %13, %cst_52 {dimension_numbers = #tpu.dot_dimension_numbers<[1], [0], [0], [1], [0, 0, 1, 1], [], []>} : vector<2x32xf32>, vector<32x96xf32>, vector<2x96xf32> -> vector<2x96xf32>
    %259 = vector.broadcast %14 : vector<1x96xf32> to vector<2x96xf32>
    %260 = arith.addf %258, %259 : vector<2x96xf32>
    %261 = vector.extract_strided_slice %257 {offsets = [0, 0], sizes = [2, 32], strides = [1, 1]} : vector<2x96xf32> to vector<2x32xf32>
    %262 = vector.extract_strided_slice %260 {offsets = [0, 0], sizes = [2, 32], strides = [1, 1]} : vector<2x96xf32> to vector<2x32xf32>
    %263 = arith.addf %261, %262 : vector<2x32xf32>
    %264 = arith.negf %263 : vector<2x32xf32>
    %265 = math.exp %264 : vector<2x32xf32>
    %cst_53 = arith.constant 1.000000e+00 : f32
    %266 = vector.broadcast %cst_53 : f32 to vector<2x32xf32>
    %267 = arith.addf %266, %265 : vector<2x32xf32>
    %268 = arith.divf %266, %267 : vector<2x32xf32>
    %269 = vector.extract_strided_slice %257 {offsets = [0, 32], sizes = [2, 32], strides = [1, 1]} : vector<2x96xf32> to vector<2x32xf32>
    %270 = vector.extract_strided_slice %260 {offsets = [0, 32], sizes = [2, 32], strides = [1, 1]} : vector<2x96xf32> to vector<2x32xf32>
    %271 = arith.addf %269, %270 : vector<2x32xf32>
    %272 = arith.negf %271 : vector<2x32xf32>
    %273 = math.exp %272 : vector<2x32xf32>
    %cst_54 = arith.constant 1.000000e+00 : f32
    %274 = vector.broadcast %cst_54 : f32 to vector<2x32xf32>
    %275 = arith.addf %274, %273 : vector<2x32xf32>
    %276 = arith.divf %274, %275 : vector<2x32xf32>
    %277 = vector.extract_strided_slice %257 {offsets = [0, 64], sizes = [2, 32], strides = [1, 1]} : vector<2x96xf32> to vector<2x32xf32>
    %278 = vector.extract_strided_slice %260 {offsets = [0, 64], sizes = [2, 32], strides = [1, 1]} : vector<2x96xf32> to vector<2x32xf32>
    %279 = arith.mulf %268, %278 : vector<2x32xf32>
    %280 = arith.addf %277, %279 : vector<2x32xf32>
    %281 = math.tanh %280 : vector<2x32xf32>
    %cst_55 = arith.constant 1.000000e+00 : f32
    %282 = vector.broadcast %cst_55 : f32 to vector<2x32xf32>
    %283 = arith.subf %282, %276 : vector<2x32xf32>
    %284 = arith.mulf %283, %281 : vector<2x32xf32>
    %285 = arith.mulf %276, %256 : vector<2x32xf32>
    %286 = arith.addf %284, %285 : vector<2x32xf32>
    %287 = vector.extract_strided_slice %10 {offsets = [12, 0], sizes = [2, 96], strides = [1, 1]} : vector<16x96xf32> to vector<2x96xf32>
    %cst_56 = arith.constant dense<0.000000e+00> : vector<2x96xf32>
    %288 = tpu.matmul %286, %13, %cst_56 {dimension_numbers = #tpu.dot_dimension_numbers<[1], [0], [0], [1], [0, 0, 1, 1], [], []>} : vector<2x32xf32>, vector<32x96xf32>, vector<2x96xf32> -> vector<2x96xf32>
    %289 = vector.broadcast %14 : vector<1x96xf32> to vector<2x96xf32>
    %290 = arith.addf %288, %289 : vector<2x96xf32>
    %291 = vector.extract_strided_slice %287 {offsets = [0, 0], sizes = [2, 32], strides = [1, 1]} : vector<2x96xf32> to vector<2x32xf32>
    %292 = vector.extract_strided_slice %290 {offsets = [0, 0], sizes = [2, 32], strides = [1, 1]} : vector<2x96xf32> to vector<2x32xf32>
    %293 = arith.addf %291, %292 : vector<2x32xf32>
    %294 = arith.negf %293 : vector<2x32xf32>
    %295 = math.exp %294 : vector<2x32xf32>
    %cst_57 = arith.constant 1.000000e+00 : f32
    %296 = vector.broadcast %cst_57 : f32 to vector<2x32xf32>
    %297 = arith.addf %296, %295 : vector<2x32xf32>
    %298 = arith.divf %296, %297 : vector<2x32xf32>
    %299 = vector.extract_strided_slice %287 {offsets = [0, 32], sizes = [2, 32], strides = [1, 1]} : vector<2x96xf32> to vector<2x32xf32>
    %300 = vector.extract_strided_slice %290 {offsets = [0, 32], sizes = [2, 32], strides = [1, 1]} : vector<2x96xf32> to vector<2x32xf32>
    %301 = arith.addf %299, %300 : vector<2x32xf32>
    %302 = arith.negf %301 : vector<2x32xf32>
    %303 = math.exp %302 : vector<2x32xf32>
    %cst_58 = arith.constant 1.000000e+00 : f32
    %304 = vector.broadcast %cst_58 : f32 to vector<2x32xf32>
    %305 = arith.addf %304, %303 : vector<2x32xf32>
    %306 = arith.divf %304, %305 : vector<2x32xf32>
    %307 = vector.extract_strided_slice %287 {offsets = [0, 64], sizes = [2, 32], strides = [1, 1]} : vector<2x96xf32> to vector<2x32xf32>
    %308 = vector.extract_strided_slice %290 {offsets = [0, 64], sizes = [2, 32], strides = [1, 1]} : vector<2x96xf32> to vector<2x32xf32>
    %309 = arith.mulf %298, %308 : vector<2x32xf32>
    %310 = arith.addf %307, %309 : vector<2x32xf32>
    %311 = math.tanh %310 : vector<2x32xf32>
    %cst_59 = arith.constant 1.000000e+00 : f32
    %312 = vector.broadcast %cst_59 : f32 to vector<2x32xf32>
    %313 = arith.subf %312, %306 : vector<2x32xf32>
    %314 = arith.mulf %313, %311 : vector<2x32xf32>
    %315 = arith.mulf %306, %286 : vector<2x32xf32>
    %316 = arith.addf %314, %315 : vector<2x32xf32>
    %317 = vector.extract_strided_slice %10 {offsets = [10, 0], sizes = [2, 96], strides = [1, 1]} : vector<16x96xf32> to vector<2x96xf32>
    %cst_60 = arith.constant dense<0.000000e+00> : vector<2x96xf32>
    %318 = tpu.matmul %316, %13, %cst_60 {dimension_numbers = #tpu.dot_dimension_numbers<[1], [0], [0], [1], [0, 0, 1, 1], [], []>} : vector<2x32xf32>, vector<32x96xf32>, vector<2x96xf32> -> vector<2x96xf32>
    %319 = vector.broadcast %14 : vector<1x96xf32> to vector<2x96xf32>
    %320 = arith.addf %318, %319 : vector<2x96xf32>
    %321 = vector.extract_strided_slice %317 {offsets = [0, 0], sizes = [2, 32], strides = [1, 1]} : vector<2x96xf32> to vector<2x32xf32>
    %322 = vector.extract_strided_slice %320 {offsets = [0, 0], sizes = [2, 32], strides = [1, 1]} : vector<2x96xf32> to vector<2x32xf32>
    %323 = arith.addf %321, %322 : vector<2x32xf32>
    %324 = arith.negf %323 : vector<2x32xf32>
    %325 = math.exp %324 : vector<2x32xf32>
    %cst_61 = arith.constant 1.000000e+00 : f32
    %326 = vector.broadcast %cst_61 : f32 to vector<2x32xf32>
    %327 = arith.addf %326, %325 : vector<2x32xf32>
    %328 = arith.divf %326, %327 : vector<2x32xf32>
    %329 = vector.extract_strided_slice %317 {offsets = [0, 32], sizes = [2, 32], strides = [1, 1]} : vector<2x96xf32> to vector<2x32xf32>
    %330 = vector.extract_strided_slice %320 {offsets = [0, 32], sizes = [2, 32], strides = [1, 1]} : vector<2x96xf32> to vector<2x32xf32>
    %331 = arith.addf %329, %330 : vector<2x32xf32>
    %332 = arith.negf %331 : vector<2x32xf32>
    %333 = math.exp %332 : vector<2x32xf32>
    %cst_62 = arith.constant 1.000000e+00 : f32
    %334 = vector.broadcast %cst_62 : f32 to vector<2x32xf32>
    %335 = arith.addf %334, %333 : vector<2x32xf32>
    %336 = arith.divf %334, %335 : vector<2x32xf32>
    %337 = vector.extract_strided_slice %317 {offsets = [0, 64], sizes = [2, 32], strides = [1, 1]} : vector<2x96xf32> to vector<2x32xf32>
    %338 = vector.extract_strided_slice %320 {offsets = [0, 64], sizes = [2, 32], strides = [1, 1]} : vector<2x96xf32> to vector<2x32xf32>
    %339 = arith.mulf %328, %338 : vector<2x32xf32>
    %340 = arith.addf %337, %339 : vector<2x32xf32>
    %341 = math.tanh %340 : vector<2x32xf32>
    %cst_63 = arith.constant 1.000000e+00 : f32
    %342 = vector.broadcast %cst_63 : f32 to vector<2x32xf32>
    %343 = arith.subf %342, %336 : vector<2x32xf32>
    %344 = arith.mulf %343, %341 : vector<2x32xf32>
    %345 = arith.mulf %336, %316 : vector<2x32xf32>
    %346 = arith.addf %344, %345 : vector<2x32xf32>
    %347 = vector.extract_strided_slice %10 {offsets = [8, 0], sizes = [2, 96], strides = [1, 1]} : vector<16x96xf32> to vector<2x96xf32>
    %cst_64 = arith.constant dense<0.000000e+00> : vector<2x96xf32>
    %348 = tpu.matmul %346, %13, %cst_64 {dimension_numbers = #tpu.dot_dimension_numbers<[1], [0], [0], [1], [0, 0, 1, 1], [], []>} : vector<2x32xf32>, vector<32x96xf32>, vector<2x96xf32> -> vector<2x96xf32>
    %349 = vector.broadcast %14 : vector<1x96xf32> to vector<2x96xf32>
    %350 = arith.addf %348, %349 : vector<2x96xf32>
    %351 = vector.extract_strided_slice %347 {offsets = [0, 0], sizes = [2, 32], strides = [1, 1]} : vector<2x96xf32> to vector<2x32xf32>
    %352 = vector.extract_strided_slice %350 {offsets = [0, 0], sizes = [2, 32], strides = [1, 1]} : vector<2x96xf32> to vector<2x32xf32>
    %353 = arith.addf %351, %352 : vector<2x32xf32>
    %354 = arith.negf %353 : vector<2x32xf32>
    %355 = math.exp %354 : vector<2x32xf32>
    %cst_65 = arith.constant 1.000000e+00 : f32
    %356 = vector.broadcast %cst_65 : f32 to vector<2x32xf32>
    %357 = arith.addf %356, %355 : vector<2x32xf32>
    %358 = arith.divf %356, %357 : vector<2x32xf32>
    %359 = vector.extract_strided_slice %347 {offsets = [0, 32], sizes = [2, 32], strides = [1, 1]} : vector<2x96xf32> to vector<2x32xf32>
    %360 = vector.extract_strided_slice %350 {offsets = [0, 32], sizes = [2, 32], strides = [1, 1]} : vector<2x96xf32> to vector<2x32xf32>
    %361 = arith.addf %359, %360 : vector<2x32xf32>
    %362 = arith.negf %361 : vector<2x32xf32>
    %363 = math.exp %362 : vector<2x32xf32>
    %cst_66 = arith.constant 1.000000e+00 : f32
    %364 = vector.broadcast %cst_66 : f32 to vector<2x32xf32>
    %365 = arith.addf %364, %363 : vector<2x32xf32>
    %366 = arith.divf %364, %365 : vector<2x32xf32>
    %367 = vector.extract_strided_slice %347 {offsets = [0, 64], sizes = [2, 32], strides = [1, 1]} : vector<2x96xf32> to vector<2x32xf32>
    %368 = vector.extract_strided_slice %350 {offsets = [0, 64], sizes = [2, 32], strides = [1, 1]} : vector<2x96xf32> to vector<2x32xf32>
    %369 = arith.mulf %358, %368 : vector<2x32xf32>
    %370 = arith.addf %367, %369 : vector<2x32xf32>
    %371 = math.tanh %370 : vector<2x32xf32>
    %cst_67 = arith.constant 1.000000e+00 : f32
    %372 = vector.broadcast %cst_67 : f32 to vector<2x32xf32>
    %373 = arith.subf %372, %366 : vector<2x32xf32>
    %374 = arith.mulf %373, %371 : vector<2x32xf32>
    %375 = arith.mulf %366, %346 : vector<2x32xf32>
    %376 = arith.addf %374, %375 : vector<2x32xf32>
    %377 = vector.extract_strided_slice %10 {offsets = [6, 0], sizes = [2, 96], strides = [1, 1]} : vector<16x96xf32> to vector<2x96xf32>
    %cst_68 = arith.constant dense<0.000000e+00> : vector<2x96xf32>
    %378 = tpu.matmul %376, %13, %cst_68 {dimension_numbers = #tpu.dot_dimension_numbers<[1], [0], [0], [1], [0, 0, 1, 1], [], []>} : vector<2x32xf32>, vector<32x96xf32>, vector<2x96xf32> -> vector<2x96xf32>
    %379 = vector.broadcast %14 : vector<1x96xf32> to vector<2x96xf32>
    %380 = arith.addf %378, %379 : vector<2x96xf32>
    %381 = vector.extract_strided_slice %377 {offsets = [0, 0], sizes = [2, 32], strides = [1, 1]} : vector<2x96xf32> to vector<2x32xf32>
    %382 = vector.extract_strided_slice %380 {offsets = [0, 0], sizes = [2, 32], strides = [1, 1]} : vector<2x96xf32> to vector<2x32xf32>
    %383 = arith.addf %381, %382 : vector<2x32xf32>
    %384 = arith.negf %383 : vector<2x32xf32>
    %385 = math.exp %384 : vector<2x32xf32>
    %cst_69 = arith.constant 1.000000e+00 : f32
    %386 = vector.broadcast %cst_69 : f32 to vector<2x32xf32>
    %387 = arith.addf %386, %385 : vector<2x32xf32>
    %388 = arith.divf %386, %387 : vector<2x32xf32>
    %389 = vector.extract_strided_slice %377 {offsets = [0, 32], sizes = [2, 32], strides = [1, 1]} : vector<2x96xf32> to vector<2x32xf32>
    %390 = vector.extract_strided_slice %380 {offsets = [0, 32], sizes = [2, 32], strides = [1, 1]} : vector<2x96xf32> to vector<2x32xf32>
    %391 = arith.addf %389, %390 : vector<2x32xf32>
    %392 = arith.negf %391 : vector<2x32xf32>
    %393 = math.exp %392 : vector<2x32xf32>
    %cst_70 = arith.constant 1.000000e+00 : f32
    %394 = vector.broadcast %cst_70 : f32 to vector<2x32xf32>
    %395 = arith.addf %394, %393 : vector<2x32xf32>
    %396 = arith.divf %394, %395 : vector<2x32xf32>
    %397 = vector.extract_strided_slice %377 {offsets = [0, 64], sizes = [2, 32], strides = [1, 1]} : vector<2x96xf32> to vector<2x32xf32>
    %398 = vector.extract_strided_slice %380 {offsets = [0, 64], sizes = [2, 32], strides = [1, 1]} : vector<2x96xf32> to vector<2x32xf32>
    %399 = arith.mulf %388, %398 : vector<2x32xf32>
    %400 = arith.addf %397, %399 : vector<2x32xf32>
    %401 = math.tanh %400 : vector<2x32xf32>
    %cst_71 = arith.constant 1.000000e+00 : f32
    %402 = vector.broadcast %cst_71 : f32 to vector<2x32xf32>
    %403 = arith.subf %402, %396 : vector<2x32xf32>
    %404 = arith.mulf %403, %401 : vector<2x32xf32>
    %405 = arith.mulf %396, %376 : vector<2x32xf32>
    %406 = arith.addf %404, %405 : vector<2x32xf32>
    %407 = vector.extract_strided_slice %10 {offsets = [4, 0], sizes = [2, 96], strides = [1, 1]} : vector<16x96xf32> to vector<2x96xf32>
    %cst_72 = arith.constant dense<0.000000e+00> : vector<2x96xf32>
    %408 = tpu.matmul %406, %13, %cst_72 {dimension_numbers = #tpu.dot_dimension_numbers<[1], [0], [0], [1], [0, 0, 1, 1], [], []>} : vector<2x32xf32>, vector<32x96xf32>, vector<2x96xf32> -> vector<2x96xf32>
    %409 = vector.broadcast %14 : vector<1x96xf32> to vector<2x96xf32>
    %410 = arith.addf %408, %409 : vector<2x96xf32>
    %411 = vector.extract_strided_slice %407 {offsets = [0, 0], sizes = [2, 32], strides = [1, 1]} : vector<2x96xf32> to vector<2x32xf32>
    %412 = vector.extract_strided_slice %410 {offsets = [0, 0], sizes = [2, 32], strides = [1, 1]} : vector<2x96xf32> to vector<2x32xf32>
    %413 = arith.addf %411, %412 : vector<2x32xf32>
    %414 = arith.negf %413 : vector<2x32xf32>
    %415 = math.exp %414 : vector<2x32xf32>
    %cst_73 = arith.constant 1.000000e+00 : f32
    %416 = vector.broadcast %cst_73 : f32 to vector<2x32xf32>
    %417 = arith.addf %416, %415 : vector<2x32xf32>
    %418 = arith.divf %416, %417 : vector<2x32xf32>
    %419 = vector.extract_strided_slice %407 {offsets = [0, 32], sizes = [2, 32], strides = [1, 1]} : vector<2x96xf32> to vector<2x32xf32>
    %420 = vector.extract_strided_slice %410 {offsets = [0, 32], sizes = [2, 32], strides = [1, 1]} : vector<2x96xf32> to vector<2x32xf32>
    %421 = arith.addf %419, %420 : vector<2x32xf32>
    %422 = arith.negf %421 : vector<2x32xf32>
    %423 = math.exp %422 : vector<2x32xf32>
    %cst_74 = arith.constant 1.000000e+00 : f32
    %424 = vector.broadcast %cst_74 : f32 to vector<2x32xf32>
    %425 = arith.addf %424, %423 : vector<2x32xf32>
    %426 = arith.divf %424, %425 : vector<2x32xf32>
    %427 = vector.extract_strided_slice %407 {offsets = [0, 64], sizes = [2, 32], strides = [1, 1]} : vector<2x96xf32> to vector<2x32xf32>
    %428 = vector.extract_strided_slice %410 {offsets = [0, 64], sizes = [2, 32], strides = [1, 1]} : vector<2x96xf32> to vector<2x32xf32>
    %429 = arith.mulf %418, %428 : vector<2x32xf32>
    %430 = arith.addf %427, %429 : vector<2x32xf32>
    %431 = math.tanh %430 : vector<2x32xf32>
    %cst_75 = arith.constant 1.000000e+00 : f32
    %432 = vector.broadcast %cst_75 : f32 to vector<2x32xf32>
    %433 = arith.subf %432, %426 : vector<2x32xf32>
    %434 = arith.mulf %433, %431 : vector<2x32xf32>
    %435 = arith.mulf %426, %406 : vector<2x32xf32>
    %436 = arith.addf %434, %435 : vector<2x32xf32>
    %437 = vector.extract_strided_slice %10 {offsets = [2, 0], sizes = [2, 96], strides = [1, 1]} : vector<16x96xf32> to vector<2x96xf32>
    %cst_76 = arith.constant dense<0.000000e+00> : vector<2x96xf32>
    %438 = tpu.matmul %436, %13, %cst_76 {dimension_numbers = #tpu.dot_dimension_numbers<[1], [0], [0], [1], [0, 0, 1, 1], [], []>} : vector<2x32xf32>, vector<32x96xf32>, vector<2x96xf32> -> vector<2x96xf32>
    %439 = vector.broadcast %14 : vector<1x96xf32> to vector<2x96xf32>
    %440 = arith.addf %438, %439 : vector<2x96xf32>
    %441 = vector.extract_strided_slice %437 {offsets = [0, 0], sizes = [2, 32], strides = [1, 1]} : vector<2x96xf32> to vector<2x32xf32>
    %442 = vector.extract_strided_slice %440 {offsets = [0, 0], sizes = [2, 32], strides = [1, 1]} : vector<2x96xf32> to vector<2x32xf32>
    %443 = arith.addf %441, %442 : vector<2x32xf32>
    %444 = arith.negf %443 : vector<2x32xf32>
    %445 = math.exp %444 : vector<2x32xf32>
    %cst_77 = arith.constant 1.000000e+00 : f32
    %446 = vector.broadcast %cst_77 : f32 to vector<2x32xf32>
    %447 = arith.addf %446, %445 : vector<2x32xf32>
    %448 = arith.divf %446, %447 : vector<2x32xf32>
    %449 = vector.extract_strided_slice %437 {offsets = [0, 32], sizes = [2, 32], strides = [1, 1]} : vector<2x96xf32> to vector<2x32xf32>
    %450 = vector.extract_strided_slice %440 {offsets = [0, 32], sizes = [2, 32], strides = [1, 1]} : vector<2x96xf32> to vector<2x32xf32>
    %451 = arith.addf %449, %450 : vector<2x32xf32>
    %452 = arith.negf %451 : vector<2x32xf32>
    %453 = math.exp %452 : vector<2x32xf32>
    %cst_78 = arith.constant 1.000000e+00 : f32
    %454 = vector.broadcast %cst_78 : f32 to vector<2x32xf32>
    %455 = arith.addf %454, %453 : vector<2x32xf32>
    %456 = arith.divf %454, %455 : vector<2x32xf32>
    %457 = vector.extract_strided_slice %437 {offsets = [0, 64], sizes = [2, 32], strides = [1, 1]} : vector<2x96xf32> to vector<2x32xf32>
    %458 = vector.extract_strided_slice %440 {offsets = [0, 64], sizes = [2, 32], strides = [1, 1]} : vector<2x96xf32> to vector<2x32xf32>
    %459 = arith.mulf %448, %458 : vector<2x32xf32>
    %460 = arith.addf %457, %459 : vector<2x32xf32>
    %461 = math.tanh %460 : vector<2x32xf32>
    %cst_79 = arith.constant 1.000000e+00 : f32
    %462 = vector.broadcast %cst_79 : f32 to vector<2x32xf32>
    %463 = arith.subf %462, %456 : vector<2x32xf32>
    %464 = arith.mulf %463, %461 : vector<2x32xf32>
    %465 = arith.mulf %456, %436 : vector<2x32xf32>
    %466 = arith.addf %464, %465 : vector<2x32xf32>
    %467 = vector.extract_strided_slice %10 {offsets = [0, 0], sizes = [2, 96], strides = [1, 1]} : vector<16x96xf32> to vector<2x96xf32>
    %cst_80 = arith.constant dense<0.000000e+00> : vector<2x96xf32>
    %468 = tpu.matmul %466, %13, %cst_80 {dimension_numbers = #tpu.dot_dimension_numbers<[1], [0], [0], [1], [0, 0, 1, 1], [], []>} : vector<2x32xf32>, vector<32x96xf32>, vector<2x96xf32> -> vector<2x96xf32>
    %469 = vector.broadcast %14 : vector<1x96xf32> to vector<2x96xf32>
    %470 = arith.addf %468, %469 : vector<2x96xf32>
    %471 = vector.extract_strided_slice %467 {offsets = [0, 0], sizes = [2, 32], strides = [1, 1]} : vector<2x96xf32> to vector<2x32xf32>
    %472 = vector.extract_strided_slice %470 {offsets = [0, 0], sizes = [2, 32], strides = [1, 1]} : vector<2x96xf32> to vector<2x32xf32>
    %473 = arith.addf %471, %472 : vector<2x32xf32>
    %474 = arith.negf %473 : vector<2x32xf32>
    %475 = math.exp %474 : vector<2x32xf32>
    %cst_81 = arith.constant 1.000000e+00 : f32
    %476 = vector.broadcast %cst_81 : f32 to vector<2x32xf32>
    %477 = arith.addf %476, %475 : vector<2x32xf32>
    %478 = arith.divf %476, %477 : vector<2x32xf32>
    %479 = vector.extract_strided_slice %467 {offsets = [0, 32], sizes = [2, 32], strides = [1, 1]} : vector<2x96xf32> to vector<2x32xf32>
    %480 = vector.extract_strided_slice %470 {offsets = [0, 32], sizes = [2, 32], strides = [1, 1]} : vector<2x96xf32> to vector<2x32xf32>
    %481 = arith.addf %479, %480 : vector<2x32xf32>
    %482 = arith.negf %481 : vector<2x32xf32>
    %483 = math.exp %482 : vector<2x32xf32>
    %cst_82 = arith.constant 1.000000e+00 : f32
    %484 = vector.broadcast %cst_82 : f32 to vector<2x32xf32>
    %485 = arith.addf %484, %483 : vector<2x32xf32>
    %486 = arith.divf %484, %485 : vector<2x32xf32>
    %487 = vector.extract_strided_slice %467 {offsets = [0, 64], sizes = [2, 32], strides = [1, 1]} : vector<2x96xf32> to vector<2x32xf32>
    %488 = vector.extract_strided_slice %470 {offsets = [0, 64], sizes = [2, 32], strides = [1, 1]} : vector<2x96xf32> to vector<2x32xf32>
    %489 = arith.mulf %478, %488 : vector<2x32xf32>
    %490 = arith.addf %487, %489 : vector<2x32xf32>
    %491 = math.tanh %490 : vector<2x32xf32>
    %cst_83 = arith.constant 1.000000e+00 : f32
    %492 = vector.broadcast %cst_83 : f32 to vector<2x32xf32>
    %493 = arith.subf %492, %486 : vector<2x32xf32>
    %494 = arith.mulf %493, %491 : vector<2x32xf32>
    %495 = arith.mulf %486, %466 : vector<2x32xf32>
    %496 = arith.addf %494, %495 : vector<2x32xf32>
    %497 = tpu.concatenate %45, %75, %105, %135, %165, %195, %225, %255 in 0 : vector<2x32xf32>, vector<2x32xf32>, vector<2x32xf32>, vector<2x32xf32>, vector<2x32xf32>, vector<2x32xf32>, vector<2x32xf32>, vector<2x32xf32> -> vector<16x32xf32>
    %498 = tpu.concatenate %496, %466, %436, %406, %376, %346, %316, %286 in 0 : vector<2x32xf32>, vector<2x32xf32>, vector<2x32xf32>, vector<2x32xf32>, vector<2x32xf32>, vector<2x32xf32>, vector<2x32xf32>, vector<2x32xf32> -> vector<16x32xf32>
    %499 = tpu.concatenate %497, %498 in 1 : vector<16x32xf32>, vector<16x32xf32> -> vector<16x64xf32>
    %c0_84 = arith.constant 0 : index
    %c0_85 = arith.constant 0 : index
    %500 = vector.load %arg13[%c0_84, %c0_85] : memref<16x64xf32, #tpu.memory_space<vmem>>, vector<16x64xf32>
    tpu.vector_store %arg13[%c0_84, %c0_85], %499 {strides = array<i32>} : memref<16x64xf32, #tpu.memory_space<vmem>>, vector<16x64xf32>,
    %c0_86 = arith.constant 0 : index
    %c0_87 = arith.constant 0 : index
    %501 = vector.load %arg9[%c0_86, %c0_87] : memref<64x9xf32, #tpu.memory_space<vmem>>, vector<64x9xf32>
    %cst_88 = arith.constant dense<0.000000e+00> : vector<16x9xf32>
    %502 = tpu.matmul %499, %501, %cst_88 {dimension_numbers = #tpu.dot_dimension_numbers<[1], [0], [0], [1], [0, 0, 1, 1], [], []>} : vector<16x64xf32>, vector<64x9xf32>, vector<16x9xf32> -> vector<16x9xf32>
    %c0_89 = arith.constant 0 : index
    %c0_90 = arith.constant 0 : index
    %503 = vector.load %arg11[%c0_89, %c0_90] : memref<1x9xf32, #tpu.memory_space<vmem>>, vector<1x9xf32>
    %504 = vector.broadcast %503 : vector<1x9xf32> to vector<16x9xf32>
    %505 = arith.addf %502, %504 : vector<16x9xf32>
    %c0_91 = arith.constant 0 : index
    %c0_92 = arith.constant 0 : index
    %506 = vector.load %arg12[%c0_91, %c0_92] : memref<10x8xf32, #tpu.memory_space<vmem>>, vector<10x8xf32>
    %c0_93 = arith.constant 0 : index
    %c0_94 = arith.constant 0 : index
    %507 = vector.load %arg10[%c0_93, %c0_94] : memref<8x9xf32, #tpu.memory_space<vmem>>, vector<8x9xf32>
    %cst_95 = arith.constant dense<0.000000e+00> : vector<10x9xf32>
    %508 = tpu.matmul %506, %507, %cst_95 {dimension_numbers = #tpu.dot_dimension_numbers<[1], [0], [0], [1], [0, 0, 1, 1], [], []>} : vector<10x8xf32>, vector<8x9xf32>, vector<10x9xf32> -> vector<10x9xf32>
    %509 = tpu.iota {dimensions = array<i32: 1>} : vector<2x9xi32>
    %510 = tpu.iota {dimensions = array<i32: 1>} : vector<2x10xi32>
    %c9_i32 = arith.constant 9 : i32
    %511 = vector.broadcast %c9_i32 : i32 to vector<2x10xi32>
    %512 = arith.cmpi eq, %510, %511 : vector<2x10xi32>
    %513 = arith.extui %512 : vector<2x10xi1> to vector<2x10xi32>
    %514 = arith.sitofp %513 : vector<2x10xi32> to vector<2x10xf32>
    %515 = vector.extract_strided_slice %505 {offsets = [0, 0], sizes = [2, 9], strides = [1, 1]} : vector<16x9xf32> to vector<2x9xf32>
    %cst_96 = arith.constant dense<0.000000e+00> : vector<2x9xf32>
    %516 = tpu.matmul %514, %508, %cst_96 {dimension_numbers = #tpu.dot_dimension_numbers<[1], [0], [0], [1], [0, 0, 1, 1], [], []>} : vector<2x10xf32>, vector<10x9xf32>, vector<2x9xf32> -> vector<2x9xf32>
    %517 = arith.addf %515, %516 : vector<2x9xf32>
    %cst_97 = arith.constant dense<0xFF800000> : vector<2xf32>
    %518 = vector.multi_reduction <maximumf>, %517, %cst_97 [1] : vector<2x9xf32> to vector<2xf32>
    %519 = vector.shape_cast %518 : vector<2xf32> to vector<2x1xf32>
    %520 = vector.broadcast %519 : vector<2x1xf32> to vector<2x9xf32>
    %521 = arith.cmpf oge, %517, %520 : vector<2x9xf32>
    %c2147483647_i32 = arith.constant 2147483647 : i32
    %522 = vector.broadcast %c2147483647_i32 : i32 to vector<2x9xi32>
    %523 = arith.select %521, %509, %522 : vector<2x9xi1>, vector<2x9xi32>
    %cst_98 = arith.constant dense<2147483647> : vector<2xi32>
    %524 = vector.multi_reduction <minsi>, %523, %cst_98 [1] : vector<2x9xi32> to vector<2xi32>
    %525 = vector.shape_cast %524 : vector<2xi32> to vector<2x1xi32>
    %526 = vector.broadcast %525 : vector<2x1xi32> to vector<2x10xi32>
    %527 = arith.cmpi eq, %510, %526 : vector<2x10xi32>
    %528 = arith.extui %527 : vector<2x10xi1> to vector<2x10xi32>
    %529 = arith.sitofp %528 : vector<2x10xi32> to vector<2x10xf32>
    %530 = vector.extract_strided_slice %505 {offsets = [2, 0], sizes = [2, 9], strides = [1, 1]} : vector<16x9xf32> to vector<2x9xf32>
    %cst_99 = arith.constant dense<0.000000e+00> : vector<2x9xf32>
    %531 = tpu.matmul %529, %508, %cst_99 {dimension_numbers = #tpu.dot_dimension_numbers<[1], [0], [0], [1], [0, 0, 1, 1], [], []>} : vector<2x10xf32>, vector<10x9xf32>, vector<2x9xf32> -> vector<2x9xf32>
    %532 = arith.addf %530, %531 : vector<2x9xf32>
    %cst_100 = arith.constant dense<0xFF800000> : vector<2xf32>
    %533 = vector.multi_reduction <maximumf>, %532, %cst_100 [1] : vector<2x9xf32> to vector<2xf32>
    %534 = vector.shape_cast %533 : vector<2xf32> to vector<2x1xf32>
    %535 = vector.broadcast %534 : vector<2x1xf32> to vector<2x9xf32>
    %536 = arith.cmpf oge, %532, %535 : vector<2x9xf32>
    %c2147483647_i32_101 = arith.constant 2147483647 : i32
    %537 = vector.broadcast %c2147483647_i32_101 : i32 to vector<2x9xi32>
    %538 = arith.select %536, %509, %537 : vector<2x9xi1>, vector<2x9xi32>
    %cst_102 = arith.constant dense<2147483647> : vector<2xi32>
    %539 = vector.multi_reduction <minsi>, %538, %cst_102 [1] : vector<2x9xi32> to vector<2xi32>
    %540 = vector.shape_cast %539 : vector<2xi32> to vector<2x1xi32>
    %541 = vector.broadcast %540 : vector<2x1xi32> to vector<2x10xi32>
    %542 = arith.cmpi eq, %510, %541 : vector<2x10xi32>
    %543 = arith.extui %542 : vector<2x10xi1> to vector<2x10xi32>
    %544 = arith.sitofp %543 : vector<2x10xi32> to vector<2x10xf32>
    %545 = vector.extract_strided_slice %505 {offsets = [4, 0], sizes = [2, 9], strides = [1, 1]} : vector<16x9xf32> to vector<2x9xf32>
    %cst_103 = arith.constant dense<0.000000e+00> : vector<2x9xf32>
    %546 = tpu.matmul %544, %508, %cst_103 {dimension_numbers = #tpu.dot_dimension_numbers<[1], [0], [0], [1], [0, 0, 1, 1], [], []>} : vector<2x10xf32>, vector<10x9xf32>, vector<2x9xf32> -> vector<2x9xf32>
    %547 = arith.addf %545, %546 : vector<2x9xf32>
    %cst_104 = arith.constant dense<0xFF800000> : vector<2xf32>
    %548 = vector.multi_reduction <maximumf>, %547, %cst_104 [1] : vector<2x9xf32> to vector<2xf32>
    %549 = vector.shape_cast %548 : vector<2xf32> to vector<2x1xf32>
    %550 = vector.broadcast %549 : vector<2x1xf32> to vector<2x9xf32>
    %551 = arith.cmpf oge, %547, %550 : vector<2x9xf32>
    %c2147483647_i32_105 = arith.constant 2147483647 : i32
    %552 = vector.broadcast %c2147483647_i32_105 : i32 to vector<2x9xi32>
    %553 = arith.select %551, %509, %552 : vector<2x9xi1>, vector<2x9xi32>
    %cst_106 = arith.constant dense<2147483647> : vector<2xi32>
    %554 = vector.multi_reduction <minsi>, %553, %cst_106 [1] : vector<2x9xi32> to vector<2xi32>
    %555 = vector.shape_cast %554 : vector<2xi32> to vector<2x1xi32>
    %556 = vector.broadcast %555 : vector<2x1xi32> to vector<2x10xi32>
    %557 = arith.cmpi eq, %510, %556 : vector<2x10xi32>
    %558 = arith.extui %557 : vector<2x10xi1> to vector<2x10xi32>
    %559 = arith.sitofp %558 : vector<2x10xi32> to vector<2x10xf32>
    %560 = vector.extract_strided_slice %505 {offsets = [6, 0], sizes = [2, 9], strides = [1, 1]} : vector<16x9xf32> to vector<2x9xf32>
    %cst_107 = arith.constant dense<0.000000e+00> : vector<2x9xf32>
    %561 = tpu.matmul %559, %508, %cst_107 {dimension_numbers = #tpu.dot_dimension_numbers<[1], [0], [0], [1], [0, 0, 1, 1], [], []>} : vector<2x10xf32>, vector<10x9xf32>, vector<2x9xf32> -> vector<2x9xf32>
    %562 = arith.addf %560, %561 : vector<2x9xf32>
    %cst_108 = arith.constant dense<0xFF800000> : vector<2xf32>
    %563 = vector.multi_reduction <maximumf>, %562, %cst_108 [1] : vector<2x9xf32> to vector<2xf32>
    %564 = vector.shape_cast %563 : vector<2xf32> to vector<2x1xf32>
    %565 = vector.broadcast %564 : vector<2x1xf32> to vector<2x9xf32>
    %566 = arith.cmpf oge, %562, %565 : vector<2x9xf32>
    %c2147483647_i32_109 = arith.constant 2147483647 : i32
    %567 = vector.broadcast %c2147483647_i32_109 : i32 to vector<2x9xi32>
    %568 = arith.select %566, %509, %567 : vector<2x9xi1>, vector<2x9xi32>
    %cst_110 = arith.constant dense<2147483647> : vector<2xi32>
    %569 = vector.multi_reduction <minsi>, %568, %cst_110 [1] : vector<2x9xi32> to vector<2xi32>
    %570 = vector.shape_cast %569 : vector<2xi32> to vector<2x1xi32>
    %571 = vector.broadcast %570 : vector<2x1xi32> to vector<2x10xi32>
    %572 = arith.cmpi eq, %510, %571 : vector<2x10xi32>
    %573 = arith.extui %572 : vector<2x10xi1> to vector<2x10xi32>
    %574 = arith.sitofp %573 : vector<2x10xi32> to vector<2x10xf32>
    %575 = vector.extract_strided_slice %505 {offsets = [8, 0], sizes = [2, 9], strides = [1, 1]} : vector<16x9xf32> to vector<2x9xf32>
    %cst_111 = arith.constant dense<0.000000e+00> : vector<2x9xf32>
    %576 = tpu.matmul %574, %508, %cst_111 {dimension_numbers = #tpu.dot_dimension_numbers<[1], [0], [0], [1], [0, 0, 1, 1], [], []>} : vector<2x10xf32>, vector<10x9xf32>, vector<2x9xf32> -> vector<2x9xf32>
    %577 = arith.addf %575, %576 : vector<2x9xf32>
    %cst_112 = arith.constant dense<0xFF800000> : vector<2xf32>
    %578 = vector.multi_reduction <maximumf>, %577, %cst_112 [1] : vector<2x9xf32> to vector<2xf32>
    %579 = vector.shape_cast %578 : vector<2xf32> to vector<2x1xf32>
    %580 = vector.broadcast %579 : vector<2x1xf32> to vector<2x9xf32>
    %581 = arith.cmpf oge, %577, %580 : vector<2x9xf32>
    %c2147483647_i32_113 = arith.constant 2147483647 : i32
    %582 = vector.broadcast %c2147483647_i32_113 : i32 to vector<2x9xi32>
    %583 = arith.select %581, %509, %582 : vector<2x9xi1>, vector<2x9xi32>
    %cst_114 = arith.constant dense<2147483647> : vector<2xi32>
    %584 = vector.multi_reduction <minsi>, %583, %cst_114 [1] : vector<2x9xi32> to vector<2xi32>
    %585 = vector.shape_cast %584 : vector<2xi32> to vector<2x1xi32>
    %586 = vector.broadcast %585 : vector<2x1xi32> to vector<2x10xi32>
    %587 = arith.cmpi eq, %510, %586 : vector<2x10xi32>
    %588 = arith.extui %587 : vector<2x10xi1> to vector<2x10xi32>
    %589 = arith.sitofp %588 : vector<2x10xi32> to vector<2x10xf32>
    %590 = vector.extract_strided_slice %505 {offsets = [10, 0], sizes = [2, 9], strides = [1, 1]} : vector<16x9xf32> to vector<2x9xf32>
    %cst_115 = arith.constant dense<0.000000e+00> : vector<2x9xf32>
    %591 = tpu.matmul %589, %508, %cst_115 {dimension_numbers = #tpu.dot_dimension_numbers<[1], [0], [0], [1], [0, 0, 1, 1], [], []>} : vector<2x10xf32>, vector<10x9xf32>, vector<2x9xf32> -> vector<2x9xf32>
    %592 = arith.addf %590, %591 : vector<2x9xf32>
    %cst_116 = arith.constant dense<0xFF800000> : vector<2xf32>
    %593 = vector.multi_reduction <maximumf>, %592, %cst_116 [1] : vector<2x9xf32> to vector<2xf32>
    %594 = vector.shape_cast %593 : vector<2xf32> to vector<2x1xf32>
    %595 = vector.broadcast %594 : vector<2x1xf32> to vector<2x9xf32>
    %596 = arith.cmpf oge, %592, %595 : vector<2x9xf32>
    %c2147483647_i32_117 = arith.constant 2147483647 : i32
    %597 = vector.broadcast %c2147483647_i32_117 : i32 to vector<2x9xi32>
    %598 = arith.select %596, %509, %597 : vector<2x9xi1>, vector<2x9xi32>
    %cst_118 = arith.constant dense<2147483647> : vector<2xi32>
    %599 = vector.multi_reduction <minsi>, %598, %cst_118 [1] : vector<2x9xi32> to vector<2xi32>
    %600 = vector.shape_cast %599 : vector<2xi32> to vector<2x1xi32>
    %601 = vector.broadcast %600 : vector<2x1xi32> to vector<2x10xi32>
    %602 = arith.cmpi eq, %510, %601 : vector<2x10xi32>
    %603 = arith.extui %602 : vector<2x10xi1> to vector<2x10xi32>
    %604 = arith.sitofp %603 : vector<2x10xi32> to vector<2x10xf32>
    %605 = vector.extract_strided_slice %505 {offsets = [12, 0], sizes = [2, 9], strides = [1, 1]} : vector<16x9xf32> to vector<2x9xf32>
    %cst_119 = arith.constant dense<0.000000e+00> : vector<2x9xf32>
    %606 = tpu.matmul %604, %508, %cst_119 {dimension_numbers = #tpu.dot_dimension_numbers<[1], [0], [0], [1], [0, 0, 1, 1], [], []>} : vector<2x10xf32>, vector<10x9xf32>, vector<2x9xf32> -> vector<2x9xf32>
    %607 = arith.addf %605, %606 : vector<2x9xf32>
    %cst_120 = arith.constant dense<0xFF800000> : vector<2xf32>
    %608 = vector.multi_reduction <maximumf>, %607, %cst_120 [1] : vector<2x9xf32> to vector<2xf32>
    %609 = vector.shape_cast %608 : vector<2xf32> to vector<2x1xf32>
    %610 = vector.broadcast %609 : vector<2x1xf32> to vector<2x9xf32>
    %611 = arith.cmpf oge, %607, %610 : vector<2x9xf32>
    %c2147483647_i32_121 = arith.constant 2147483647 : i32
    %612 = vector.broadcast %c2147483647_i32_121 : i32 to vector<2x9xi32>
    %613 = arith.select %611, %509, %612 : vector<2x9xi1>, vector<2x9xi32>
    %cst_122 = arith.constant dense<2147483647> : vector<2xi32>
    %614 = vector.multi_reduction <minsi>, %613, %cst_122 [1] : vector<2x9xi32> to vector<2xi32>
    %615 = vector.shape_cast %614 : vector<2xi32> to vector<2x1xi32>
    %616 = vector.broadcast %615 : vector<2x1xi32> to vector<2x10xi32>
    %617 = arith.cmpi eq, %510, %616 : vector<2x10xi32>
    %618 = arith.extui %617 : vector<2x10xi1> to vector<2x10xi32>
    %619 = arith.sitofp %618 : vector<2x10xi32> to vector<2x10xf32>
    %620 = vector.extract_strided_slice %505 {offsets = [14, 0], sizes = [2, 9], strides = [1, 1]} : vector<16x9xf32> to vector<2x9xf32>
    %cst_123 = arith.constant dense<0.000000e+00> : vector<2x9xf32>
    %621 = tpu.matmul %619, %508, %cst_123 {dimension_numbers = #tpu.dot_dimension_numbers<[1], [0], [0], [1], [0, 0, 1, 1], [], []>} : vector<2x10xf32>, vector<10x9xf32>, vector<2x9xf32> -> vector<2x9xf32>
    %622 = arith.addf %620, %621 : vector<2x9xf32>
    %623 = tpu.concatenate %517, %532, %547, %562, %577, %592, %607, %622 in 0 : vector<2x9xf32>, vector<2x9xf32>, vector<2x9xf32>, vector<2x9xf32>, vector<2x9xf32>, vector<2x9xf32>, vector<2x9xf32>, vector<2x9xf32> -> vector<16x9xf32>
    %cst_124 = arith.constant dense<0xFF800000> : vector<16xf32>
    %624 = vector.multi_reduction <maximumf>, %623, %cst_124 [1] : vector<16x9xf32> to vector<16xf32>
    %625 = vector.shape_cast %624 : vector<16xf32> to vector<16x1xf32>
    %626 = vector.broadcast %625 : vector<16x1xf32> to vector<16x9xf32>
    %627 = arith.subf %623, %626 : vector<16x9xf32>
    %628 = math.exp %627 : vector<16x9xf32>
    %cst_125 = arith.constant dense<0.000000e+00> : vector<16xf32>
    %629 = vector.multi_reduction <add>, %628, %cst_125 [1] : vector<16x9xf32> to vector<16xf32>
    %630 = vector.shape_cast %629 : vector<16xf32> to vector<16x1xf32>
    %631 = vector.broadcast %630 : vector<16x1xf32> to vector<16x9xf32>
    %632 = arith.divf %628, %631 : vector<16x9xf32>
    %c0_126 = arith.constant 0 : index
    %c0_127 = arith.constant 0 : index
    %633 = vector.load %arg14[%c0_126, %c0_127] : memref<16x9xf32, #tpu.memory_space<vmem>>, vector<16x9xf32>
    tpu.vector_store %arg14[%c0_126, %c0_127], %632 {strides = array<i32>} : memref<16x9xf32, #tpu.memory_space<vmem>>, vector<16x9xf32>,
    return
  }
}

</mosaic_0001>

<bundles_post_ra>
// kernel: _entity_path.1
= control target key start
LH: loop header
LB: loop body
LE: loop exit
PB: predicated region body
PF: predicated region fallthrough
CT: control target
= control target key end

     0   :  { %20 = vsyncpa [#allocation3], 0  ;;  %s2691_s0 = inlined_call_operand.vmem [shape: f32[16,96], index: 0, kind: input, shape index: {}]   ;;  %s2692_s1 = inlined_call_operand.hbm [shape: f32[96,96], index: 1, kind: input, shape index: {}]   ;;  %s2693_s2 = inlined_call_operand.vmem [shape: f32[1,96], index: 2, kind: input, shape index: {}]   ;;  %s2694_s3 = inlined_call_operand.hbm [shape: f32[96,96], index: 3, kind: input, shape index: {}]   ;;  %s2695_s4 = inlined_call_operand.vmem [shape: f32[1,96], index: 4, kind: input, shape index: {}]   ;;  %s2696_s5 = inlined_call_operand.vmem [shape: f32[32,96], index: 5, kind: input, shape index: {}]   ;;  %s2697_s6 = inlined_call_operand.vmem [shape: f32[1,96], index: 6, kind: input, shape index: {}]   ;;  %s2698_s7 = inlined_call_operand.vmem [shape: f32[32,96], index: 7, kind: input, shape index: {}]   ;;  %s2699_s8 = inlined_call_operand.vmem [shape: f32[1,96], index: 8, kind: input, shape index: {}]   ;;  %s2700_s9 = inlined_call_operand.vmem [shape: f32[64,9], index: 9, kind: input, shape index: {}]   ;;  %s2701_s10 = inlined_call_operand.vmem [shape: f32[8,9], index: 10, kind: input, shape index: {}]   ;;  %s2702_s11 = inlined_call_operand.vmem [shape: f32[1,9], index: 11, kind: input, shape index: {}]   ;;  %s2703_s12 = inlined_call_operand.vmem [shape: f32[10,8], index: 12, kind: input, shape index: {}]   ;;  %s2704_s13 = inlined_call_operand.vmem [shape: f32[16,64], index: 13, kind: output, shape index: {0}]   ;;  %s2705_s14 = inlined_call_operand.vmem [shape: f32[16,9], index: 14, kind: output, shape index: {1}]  }
   0x1   :  { %s28_s15 = sshll.u32 %s2692_s1, 4  ;;  %s29_s15 = int_to_ptr.hbm [resolvable:$true] %s28_s15 }
   0x2   :  { %21 = vsyncpa [#allocation5], 0  ;;  %s2048_s16 = smov [#allocation2]   ;;  %s43_s20 = sshll.u32 %s2694_s3, 4  ;;  %s44_s20 = int_to_ptr.hbm [resolvable:$true] %s43_s20 }
   0x3   :  { %s30_s17 = sshll.u32 %s2048_s16, 4  ;;  %s2049_s21 = smov 128   ;;  %s31_s17 = int_to_ptr.vmem [resolvable:$true] %s30_s17 }
   0x4   :  { %s2050_s22 = smov 8   ;;  %s2051_s23 = smov [#allocation4]  }
   0x5   :  { %36 = dma.hbm_to_vmem [thread:$0]  %s29_s15, 1536, %s31_s17, [#allocation3], %s2049_s21, %s2049_s21, %s2050_s22  }
   0x6   :  { %s45_s24 = sshll.u32 %s2051_s23, 4  ;;  %s46_s24 = int_to_ptr.vmem [resolvable:$true] %s45_s24 }
   0x7   :  { %51 = dma.hbm_to_vmem [thread:$0]  %s44_s20, 1536, %s46_s24, [#allocation5], %s2049_s21, %s2049_s21, %s2050_s22  }
   0x8   :  { %2044 = dma.done.wait [#allocation3], 1536  }
   0x9   :  { %2045 = vsyncadd [#allocation3], 4294965760 }
   0xa   :  { %2046 = dma.done.wait [#allocation5], 1536  }
   0xb   :  { %2047 = vsyncadd [#allocation5], 4294965760  ;;  %v91_v0 = vld [vmem:[#allocation2 + $0x58] sm:$0xff]  ;;  %v90_v2 = vld [vmem:[#allocation2 + $0x50] sm:$0xff]  ;;  %v2052_v9 = vmov 0.0   ;;  %vm96_vm0 = vcmask 785408  }
   0xc   :  { %v2139_v1 = vld [vmem:[%s2696_s5 + $0x18] sm:$0xff]  ;;  %107 = vmatpush.msra.mxu0 %v91_v0  ;;  %v2145_v3 = vld [vmem:[%s2696_s5 + $0x10] sm:$0xff]  ;;  %v89_v4 = vld [vmem:[#allocation2 + $0x48] sm:$0xff]  ;;  %s2053_s18 = smov 64   ;;  %vm178_vm5 = vcmask 261120   ;;  %vm1259_vm14 = vcmask 1041408  }
   0xd   :  { %194 = vmatpush.msra.mxu2 %v2139_v1  ;;  %v2150_v5 = vld [vmem:[%s2696_s5 + $0x8] sm:$0xff]  ;;  %258 = vmatpush.msra.mxu3 %v2139_v1  ;;  %v88_v6 = vld [vmem:[#allocation2 + $0x40] sm:$0xff]  ;;  %v87_v8 = vld [vmem:[#allocation2 + $0x38] sm:$0xff]  ;;  %vm1261_vm15 = vcmask 1043456  }
   0xe   :  { %108 = vmatpush.msra.mxu0 %v90_v2  ;;  %v2157_v7 = vld [vmem:[%s2696_s5] sm:$0xff]  ;;  %v86_v10 = vld [vmem:[#allocation2 + $0x30] sm:$0xff]  ;;  %v85_v11 = vld [vmem:[#allocation2 + $0x28] sm:$0xff] }
   0xf   :  { %195 = vmatpush.msra.mxu2 %v2145_v3  ;;  %259 = vmatpush.msra.mxu3 %v2145_v3  ;;  %v84_v12 = vld [vmem:[#allocation2 + $0x20] sm:$0xff]  ;;  %v83_v13 = vld [vmem:[#allocation2 + $0x18] sm:$0xff]  ;;  %v82_v14 = vld [vmem:[#allocation2 + $0x10] sm:$0xff] }
  0x10   :  { %109 = vmatpush.msra.mxu0 %v89_v4  ;;  %v81_v15 = vld [vmem:[#allocation2 + $0x8] sm:$0xff]  ;;  %v80_v16 = vld [vmem:[#allocation2] sm:$0xff] }
  0x11   :  { %196 = vmatpush.msra.mxu2 %v2150_v5  ;;  %260 = vmatpush.msra.mxu3 %v2150_v5  ;;  %v2179_v17 = vld [vmem:[%s2691_s0] sm:$0xff] }
  0x12   :  { %110 = vmatpush.msra.mxu0 %v88_v6  ;;  %v2187_v18 = vld [vmem:[%s2697_s6] ss:$0 sm:$0xff] }
  0x13   :  { %197 = vmatpush.msra.mxu2 %v2157_v7  ;;  %261 = vmatpush.msra.mxu3 %v2157_v7  ;;  %v2194_v21 = vld [vmem:[%s2693_s2] ss:$0 sm:$0xff]  ;;  %s2054_s2 = smov 96  }
  0x14   :  { %198 = vmatmul.f32.vlgmr.msra.gmra.mxu2 %v2052_v9  ;;  %111 = vmatpush.msra.mxu0 %v87_v8 }
  0x15   :  { %327 = vmatpush.msrb.mxu2 %v2139_v1  ;;  %396 = vmatpush.msrb.mxu3 %v2139_v1 }
  0x16   :  { %112 = vmatpush.msra.mxu0 %v86_v10 }
  0x17   :  { %328 = vmatpush.msrb.mxu2 %v2145_v3  ;;  %397 = vmatpush.msrb.mxu3 %v2145_v3 }
  0x18   :  { %113 = vmatpush.msra.mxu0 %v85_v11 }
  0x19   :  { %329 = vmatpush.msrb.mxu2 %v2150_v5  ;;  %398 = vmatpush.msrb.mxu3 %v2150_v5 }
  0x1a   :  { %114 = vmatpush.msra.mxu0 %v84_v12 }
  0x1b   :  { %330 = vmatpush.msrb.mxu2 %v2157_v7  ;;  %399 = vmatpush.msrb.mxu3 %v2157_v7 }
  0x1c   :  { %115 = vmatpush.msra.mxu0 %v83_v13 }
  0x1d   :  { %465 = vmatpush.msra.mxu2 %v2139_v1 }
  0x1e   :  { %116 = vmatpush.msra.mxu0 %v82_v14 }
  0x1f   :  { %466 = vmatpush.msra.mxu2 %v2145_v3 }
  0x20   :  { %117 = vmatpush.msra.mxu0 %v81_v15 }
  0x21   :  { %467 = vmatpush.msra.mxu2 %v2150_v5 }
  0x22   :  { %118 = vmatpush.msra.mxu0 %v80_v16 }
  0x23   :  { %468 = vmatpush.msra.mxu2 %v2157_v7  ;;  %1817 = vmatmul.msk.f32.vlgmr.msra.gmra.mxu0 %vm96_vm0, %v2179_v17 }
  0x97   :  { %v199_v19 = vpop.f32.mrf.mxu2 }
  0x98   :  { %v200_v20 = vadd.f32 %v2187_v18, %v199_v19 }
  0x9a   :  { %223 = vrot.lane.b32.xlu0 %v200_v20, %s2053_s18 }
  0xa0   :  { %v120_v22 = vpop.f32.mrf.mxu0 }
  0xa1   :  { %v2197_v23 = vadd.f32 %v2194_v21, %v120_v22 }
  0xa3   :  { %v202_v24 = vadd.f32 %v200_v20, %v2197_v23 }
  0xa5   :  { %v1821_v25 = vmul.f32 -1.442695, %v202_v24 }
  0xa7   :  { %1891 = vpow2.f32 %v1821_v25 }
  0xad   :  { %v1892_v26 = vpop.eup %1891 }
  0xae   :  { %v206_v27 = vadd.f32 1.0, %v1892_v26 }
  0xb0   :  { %1893 = vrcp.f32 %v206_v27  ;;  %v218_v33 = vand.u32 2147483648, %v206_v27  ;;  %vm212_vm2 = vweird.f32 %v206_v27  ;;  %v216_v34 = vand.u32 2147483647, %v206_v27 }
  0xb2   :  { %v219_v36 = vor.u32 1.1754944e-38, %v218_v33  ;;  %vm217_vm4 = vcmp.eq.f32.partialorder %v216_v34, 8.507059e+37 }
  0xb6   :  { %v1894_v28 = vpop.eup %1893 }
  0xb7   :  { %v208_v29 = vmul.f32 %v1894_v28, %v206_v27  ;;  %vm213_vm1 = vweird.f32 %v1894_v28 }
  0xb8   :  { %vm214_vm3 = vmor %vm212_vm2, %vm213_vm1 }
  0xb9   :  { %v209_v30 = vsub.f32 1.0, %v208_v29 }
  0xbb   :  { %v210_v31 = vmul.f32 %v1894_v28, %v209_v30 }
  0xbd   :  { %v211_v32 = vadd.f32 %v1894_v28, %v210_v31 }
  0xbf   :  { %v215_v35 = vsel %vm214_vm3, %v1894_v28, %v211_v32 }
  0xc0   :  { %v220_v38 = vsel %vm217_vm4, %v219_v36, %v215_v35 }
  0xc1   :  { %v233_v43 = vsub.f32 1.0, %v220_v38  ;;  %v239_v45 = vmul.f32 0.0, %v220_v38 }
 0x10c   :  { %v224_v37 = vpop.permute.xlu0 %223 }
 0x10d   :  { %v226_v39 = vmul.f32 %v224_v37, %v220_v38 }
 0x10f   :  { %228 = vrot.lane.b32.xlu0 %v226_v39, %s2053_s18 }
 0x181   :  { %v229_v40 = vpop.permute.xlu0 %228 }
 0x182   :  { %v231_v41 = vadd.f32 %v229_v40, %v2197_v23 }
 0x184   :  { %1895 = vtanh.f32 %v231_v41 }
 0x18a   :  { %v1896_v42 = vpop.eup %1895 }
 0x18b   :  { %235 = vrot.lane.b32.xlu1 %v1896_v42, %s2054_s2 }
 0x1fd   :  { %v236_v44 = vpop.permute.xlu1 %235 }
 0x1fe   :  { %v238_v46 = vmul.f32 %v236_v44, %v233_v43 }
 0x200   :  { %v2203_v47 = vadd.f32 %v239_v45, %v238_v46 }
 0x202   :  { %242 = vrot.lane.b32.xlu1 %v2203_v47, %s2054_s2  ;;  %v305_v13 = vrot.slane %v2203_v47, 6 }
 0x274   :  { %v243_v48 = vpop.permute.xlu1 %242 }
 0x275   :  { %1822 = vmatmul.msk.f32.vlgmr.msra.gmra.mxu3 %vm178_vm5, %v243_v48 }
 0x276   :  { %530 = vmatpush.msra.mxu3 %v2139_v1 }
 0x278   :  { %531 = vmatpush.msra.mxu3 %v2145_v3 }
 0x27a   :  { %532 = vmatpush.msra.mxu3 %v2150_v5 }
 0x27c   :  { %533 = vmatpush.msra.mxu3 %v2157_v7 }
 0x2f8   :  { %v263_v49 = vpop.f32.mrf.mxu3 }
 0x2f9   :  { %v264_v50 = vadd.f32 %v2187_v18, %v263_v49 }
 0x2fb   :  { %v267_v51 = vrot.slane %v264_v50, 6 }
 0x2fd   :  { %289 = vrot.lane.b32.xlu2 %v267_v51, %s2053_s18  ;;  %v269_v52 = vadd.f32 %v267_v51, %v2197_v23 }
 0x2ff   :  { %v1823_v53 = vmul.f32 -1.442695, %v269_v52 }
 0x301   :  { %1897 = vpow2.f32 %v1823_v53 }
 0x307   :  { %v1898_v54 = vpop.eup %1897 }
 0x308   :  { %v273_v55 = vadd.f32 1.0, %v1898_v54 }
 0x30a   :  { %1899 = vrcp.f32 %v273_v55  ;;  %v285_v61 = vand.u32 2147483648, %v273_v55  ;;  %vm279_vm7 = vweird.f32 %v273_v55  ;;  %v283_v62 = vand.u32 2147483647, %v273_v55 }
 0x30c   :  { %v286_v0 = vor.u32 1.1754944e-38, %v285_v61  ;;  %vm284_vm9 = vcmp.eq.f32.partialorder %v283_v62, 8.507059e+37 }
 0x310   :  { %v1900_v56 = vpop.eup %1899 }
 0x311   :  { %v275_v57 = vmul.f32 %v1900_v56, %v273_v55  ;;  %vm280_vm6 = vweird.f32 %v1900_v56 }
 0x312   :  { %vm281_vm8 = vmor %vm279_vm7, %vm280_vm6  ;;  %vm1263_vm6 = vcmask 1045504  }
 0x313   :  { %v276_v58 = vsub.f32 1.0, %v275_v57 }
 0x315   :  { %v277_v59 = vmul.f32 %v1900_v56, %v276_v58 }
 0x317   :  { %v278_v60 = vadd.f32 %v1900_v56, %v277_v59 }
 0x319   :  { %v282_v63 = vsel %vm281_vm8, %v1900_v56, %v278_v60 }
 0x31a   :  { %v287_v4 = vsel %vm284_vm9, %v286_v0, %v282_v63 }
 0x31b   :  { %v299_v12 = vsub.f32 1.0, %v287_v4  ;;  %v307_v16 = vmul.f32 %v305_v13, %v287_v4 }
 0x357   :  { %v290_v2 = vpop.permute.xlu2 %289 }
 0x358   :  { %v292_v6 = vmul.f32 %v290_v2, %v287_v4 }
 0x35a   :  { %294 = vrot.lane.b32.xlu2 %v292_v6, %s2053_s18 }
 0x3b4   :  { %v295_v8 = vpop.permute.xlu2 %294 }
 0x3b5   :  { %v297_v10 = vadd.f32 %v295_v8, %v2197_v23 }
 0x3b7   :  { %1901 = vtanh.f32 %v297_v10 }
 0x3bd   :  { %v1902_v11 = vpop.eup %1901 }
 0x3be   :  { %301 = vrot.lane.b32.xlu0 %v1902_v11, %s2054_s2 }
 0x430   :  { %v302_v14 = vpop.permute.xlu0 %301 }
 0x431   :  { %v304_v15 = vmul.f32 %v302_v14, %v299_v12 }
 0x433   :  { %v308_v19 = vadd.f32 %v307_v16, %v304_v15  ;;  %v79_v15 = vld [vmem:[%s2691_s0 + $0x8] sm:$0xff]  ;;  %v2258_v16 = vld [vmem:[%s2698_s7 + $0x18] sm:$0xff] }
 0x434   :  { %1818 = vmatmul.msk.f32.gmra.mxu0 %vm96_vm0, %v79_v15 }
 0x435   :  { %v310_v20 = vrot.slane %v308_v19, 2  ;;  %v374_v40 = vrot.slane %v308_v19, 6  ;;  %v1260_v53 = vsel %vm1259_vm14, %v2203_v47, %v308_v19  ;;  %v2264_v19 = vld [vmem:[%s2698_s7 + $0x10] sm:$0xff]  ;;  %734 = vmatpush.msrb.mxu0 %v2258_v16 }
 0x437   :  { %311 = vrot.lane.b32.xlu1 %v310_v20, %s2054_s2  ;;  %v136_v20 = vld [vmem:[#allocation4 + $0x50] sm:$0xff]  ;;  %735 = vmatpush.msrb.mxu0 %v2264_v19 }
 0x4a9   :  { %v312_v22 = vpop.permute.xlu1 %311 }
 0x4aa   :  { %1824 = vmatmul.msk.f32.vlgmr.msrb.gmra.mxu2 %vm178_vm5, %v312_v22  ;;  %v2270_v22 = vld [vmem:[%s2698_s7 + $0x8] sm:$0xff] }
 0x4ab   :  { %599 = vmatpush.msrb.mxu2 %v2139_v1  ;;  %736 = vmatpush.msrb.mxu0 %v2270_v22 }
 0x4ad   :  { %600 = vmatpush.msrb.mxu2 %v2145_v3 }
 0x4af   :  { %601 = vmatpush.msrb.mxu2 %v2150_v5 }
 0x4b1   :  { %602 = vmatpush.msrb.mxu2 %v2157_v7 }
 0x52d   :  { %v332_v24 = vpop.f32.mrf.mxu2 }
 0x52e   :  { %v333_v25 = vadd.f32 %v2187_v18, %v332_v24  ;;  %v135_v24 = vld [vmem:[#allocation4 + $0x48] sm:$0xff] }
 0x530   :  { %v336_v26 = vrot.slane %v333_v25, 4  ;;  %v2276_v25 = vld [vmem:[%s2698_s7] sm:$0xff] }
 0x531   :  { %737 = vmatpush.msrb.mxu0 %v2276_v25 }
 0x532   :  { %v338_v27 = vadd.f32 %v336_v26, %v2197_v23  ;;  %358 = vrot.lane.b32.xlu2 %v336_v26, %s2053_s18  ;;  %v134_v26 = vld [vmem:[#allocation4 + $0x40] sm:$0xff]  ;;  %738 = vmatmul.f32.vlgmr.msrb.gmra.mxu0 %v2052_v9 }
 0x533   :  { %1004 = vmatpush.msra.mxu0 %v2258_v16 }
 0x534   :  { %v1825_v28 = vmul.f32 -1.442695, %v338_v27  ;;  %v133_v27 = vld [vmem:[#allocation4 + $0x38] sm:$0xff] }
 0x535   :  { %1005 = vmatpush.msra.mxu0 %v2264_v19 }
 0x536   :  { %1903 = vpow2.f32 %v1825_v28  ;;  %v132_v28 = vld [vmem:[#allocation4 + $0x30] sm:$0xff] }
 0x537   :  { %1006 = vmatpush.msra.mxu0 %v2270_v22 }
 0x539   :  { %1007 = vmatpush.msra.mxu0 %v2276_v25 }
 0x53c   :  { %v1904_v29 = vpop.eup %1903 }
 0x53d   :  { %v342_v30 = vadd.f32 1.0, %v1904_v29  ;;  %v131_v29 = vld [vmem:[#allocation4 + $0x28] sm:$0xff] }
 0x53f   :  { %1905 = vrcp.f32 %v342_v30  ;;  %v354_v34 = vand.u32 2147483648, %v342_v30  ;;  %v352_v36 = vand.u32 2147483647, %v342_v30  ;;  %vm348_vm11 = vweird.f32 %v342_v30 }
 0x541   :  { %v355_v38 = vor.u32 1.1754944e-38, %v354_v34  ;;  %vm353_vm13 = vcmp.eq.f32.partialorder %v352_v36, 8.507059e+37  ;;  %v126_v34 = vld [vmem:[#allocation4] sm:$0xff] }
 0x545   :  { %v1906_v31 = vpop.eup %1905 }
 0x546   :  { %v344_v32 = vmul.f32 %v1906_v31, %v342_v30  ;;  %vm349_vm10 = vweird.f32 %v1906_v31  ;;  %v130_v30 = vld [vmem:[#allocation4 + $0x20] sm:$0xff] }
 0x547   :  { %vm350_vm12 = vmor %vm348_vm11, %vm349_vm10 }
 0x548   :  { %v345_v33 = vsub.f32 1.0, %v344_v32  ;;  %v128_v32 = vld [vmem:[#allocation4 + $0x10] sm:$0xff] }
 0x54a   :  { %v346_v35 = vmul.f32 %v1906_v31, %v345_v33  ;;  %v127_v33 = vld [vmem:[#allocation4 + $0x8] sm:$0xff] }
 0x54c   :  { %v347_v37 = vadd.f32 %v1906_v31, %v346_v35 }
 0x54e   :  { %v351_v39 = vsel %vm350_vm12, %v1906_v31, %v347_v37  ;;  %v129_v31 = vld [vmem:[#allocation4 + $0x18] sm:$0xff] }
 0x54f   :  { %v356_v41 = vsel %vm353_vm13, %v355_v38, %v351_v39 }
 0x550   :  { %v376_v42 = vmul.f32 %v374_v40, %v356_v41  ;;  %v368_v49 = vsub.f32 1.0, %v356_v41 }
 0x58c   :  { %v359_v43 = vpop.permute.xlu2 %358 }
 0x58d   :  { %v361_v44 = vmul.f32 %v359_v43, %v356_v41  ;;  %v2311_v43 = vld [vmem:[%s2699_s8] ss:$0 sm:$0xff] }
 0x58f   :  { %363 = vrot.lane.b32.xlu0 %v361_v44, %s2053_s18 }
 0x601   :  { %v364_v45 = vpop.permute.xlu0 %363 }
 0x602   :  { %v366_v46 = vadd.f32 %v364_v45, %v2197_v23 }
 0x604   :  { %1907 = vtanh.f32 %v366_v46 }
 0x60a   :  { %v1908_v48 = vpop.eup %1907 }
 0x60b   :  { %370 = vrot.lane.b32.xlu1 %v1908_v48, %s2054_s2 }
 0x67d   :  { %v371_v50 = vpop.permute.xlu1 %370 }
 0x67e   :  { %v373_v51 = vmul.f32 %v371_v50, %v368_v49  ;;  %v1889_v49 = vld [vmem:[%s2695_s4] ss:$0 sm:$0xff] }
 0x680   :  { %v2231_v52 = vadd.f32 %v376_v42, %v373_v51 }
 0x682   :  { %v379_v54 = vrot.slane %v2231_v52, 4  ;;  %v2238_v55 = vsel %vm1261_vm15, %v1260_v53, %v2231_v52  ;;  %v443_v36 = vrot.slane %v2231_v52, 6 }
 0x684   :  { %380 = vrot.lane.b32.xlu2 %v379_v54, %s2054_s2 }
 0x6de   :  { %v381_v56 = vpop.permute.xlu2 %380 }
 0x6df   :  { %1826 = vmatmul.msk.f32.vlgmr.msrb.gmra.mxu3 %vm178_vm5, %v381_v56 }
 0x6e0   :  { %668 = vmatpush.msrb.mxu3 %v2139_v1 }
 0x6e2   :  { %669 = vmatpush.msrb.mxu3 %v2145_v3 }
 0x6e4   :  { %670 = vmatpush.msrb.mxu3 %v2150_v5 }
 0x6e6   :  { %671 = vmatpush.msrb.mxu3 %v2157_v7 }
 0x762   :  { %v401_v47 = vpop.f32.mrf.mxu3 }
 0x763   :  { %v402_v57 = vadd.f32 %v2187_v18, %v401_v47 }
 0x765   :  { %v405_v58 = vrot.slane %v402_v57, 2 }
 0x767   :  { %427 = vrot.lane.b32.xlu0 %v405_v58, %s2053_s18  ;;  %v407_v59 = vadd.f32 %v405_v58, %v2197_v23 }
 0x769   :  { %v1827_v60 = vmul.f32 -1.442695, %v407_v59 }
 0x76b   :  { %1909 = vpow2.f32 %v1827_v60 }
 0x771   :  { %v1910_v61 = vpop.eup %1909 }
 0x772   :  { %v411_v62 = vadd.f32 1.0, %v1910_v61 }
 0x774   :  { %1911 = vrcp.f32 %v411_v62  ;;  %v423_v7 = vand.u32 2147483648, %v411_v62  ;;  %vm417_vm2 = vweird.f32 %v411_v62  ;;  %v421_v2 = vand.u32 2147483647, %v411_v62 }
 0x776   :  { %v424_v6 = vor.u32 1.1754944e-38, %v423_v7  ;;  %vm422_vm4 = vcmp.eq.f32.partialorder %v421_v2, 8.507059e+37 }
 0x77a   :  { %v1912_v1 = vpop.eup %1911 }
 0x77b   :  { %v413_v63 = vmul.f32 %v1912_v1, %v411_v62  ;;  %vm418_vm1 = vweird.f32 %v1912_v1 }
 0x77c   :  { %vm419_vm3 = vmor %vm417_vm2, %vm418_vm1 }
 0x77d   :  { %v414_v3 = vsub.f32 1.0, %v413_v63 }
 0x77f   :  { %v415_v0 = vmul.f32 %v1912_v1, %v414_v3 }
 0x781   :  { %v416_v5 = vadd.f32 %v1912_v1, %v415_v0 }
 0x783   :  { %v420_v4 = vsel %vm419_vm3, %v1912_v1, %v416_v5 }
 0x784   :  { %v425_v10 = vsel %vm422_vm4, %v424_v6, %v420_v4 }
 0x785   :  { %v437_v35 = vsub.f32 1.0, %v425_v10  ;;  %v445_v38 = vmul.f32 %v443_v36, %v425_v10 }
 0x7d9   :  { %v428_v8 = vpop.permute.xlu0 %427 }
 0x7da   :  { %v430_v11 = vmul.f32 %v428_v8, %v425_v10 }
 0x7dc   :  { %432 = vrot.lane.b32.xlu1 %v430_v11, %s2053_s18 }
 0x84e   :  { %v433_v12 = vpop.permute.xlu1 %432 }
 0x84f   :  { %v435_v13 = vadd.f32 %v433_v12, %v2197_v23  ;;  %v137_v23 = vld [vmem:[#allocation4 + $0x58] sm:$0xff] }
 0x850   :  { %146 = vmatpush.msra.mxu1 %v137_v23 }
 0x851   :  { %1913 = vtanh.f32 %v435_v13 }
 0x852   :  { %147 = vmatpush.msra.mxu1 %v136_v20 }
 0x854   :  { %148 = vmatpush.msra.mxu1 %v135_v24 }
 0x856   :  { %149 = vmatpush.msra.mxu1 %v134_v26 }
 0x857   :  { %v1914_v14 = vpop.eup %1913 }
 0x858   :  { %439 = vrot.lane.b32.xlu2 %v1914_v14, %s2054_s2  ;;  %150 = vmatpush.msra.mxu1 %v133_v27 }
 0x85a   :  { %151 = vmatpush.msra.mxu1 %v132_v28 }
 0x85c   :  { %152 = vmatpush.msra.mxu1 %v131_v29 }
 0x85e   :  { %153 = vmatpush.msra.mxu1 %v130_v30 }
 0x860   :  { %154 = vmatpush.msra.mxu1 %v129_v31 }
 0x862   :  { %155 = vmatpush.msra.mxu1 %v128_v32 }
 0x864   :  { %156 = vmatpush.msra.mxu1 %v127_v33 }
 0x866   :  { %157 = vmatpush.msra.mxu1 %v126_v34 }
 0x867   :  { %1819 = vmatmul.msk.f32.vlgmr.msra.gmra.mxu1 %vm96_vm0, %v2179_v17  ;;  %v123_v17 = vpop.f32.mrf.mxu0 }
 0x868   :  { %801 = vmatpush.msrb.mxu1 %v2258_v16  ;;  %v2332_v6 = vadd.f32 %v2194_v21, %v123_v17 }
 0x86a   :  { %802 = vmatpush.msrb.mxu1 %v2264_v19 }
 0x86c   :  { %803 = vmatpush.msrb.mxu1 %v2270_v22 }
 0x86e   :  { %804 = vmatpush.msrb.mxu1 %v2276_v25 }
 0x86f   :  { %1820 = vmatmul.msk.f32.gmra.mxu1 %vm96_vm0, %v79_v15  ;;  %v739_v44 = vpop.f32.mrf.mxu0 }
 0x870   :  { %1073 = vmatpush.msra.mxu1 %v2258_v16  ;;  %v740_v45 = vadd.f32 %v2311_v43, %v739_v44 }
 0x872   :  { %1074 = vmatpush.msra.mxu1 %v2264_v19  ;;  %v743_v46 = vrot.slane %v740_v45, 2 }
 0x874   :  { %1075 = vmatpush.msra.mxu1 %v2270_v22  ;;  %765 = vrot.lane.b32.xlu2 %v743_v46, %s2053_s18 }
 0x876   :  { %1076 = vmatpush.msra.mxu1 %v2276_v25 }
 0x8b2   :  { %v440_v37 = vpop.permute.xlu2 %439 }
 0x8b3   :  { %v442_v39 = vmul.f32 %v440_v37, %v437_v35 }
 0x8b5   :  { %v2289_v40 = vadd.f32 %v445_v38, %v442_v39 }
 0x8b7   :  { %v448_v41 = vrot.slane %v2289_v40, 6  ;;  %v2297_v42 = vsel %vm1263_vm6, %v2238_v55, %v2289_v40 }
 0x8b9   :  { %449 = vrot.lane.b32.xlu0 %v448_v41, %s2054_s2 }
 0x8ce   :  { %v766_v2 = vpop.permute.xlu2 %765 }
 0x8e4   :  { %v159_v50 = vpop.f32.mrf.mxu1 }
 0x8e5   :  { %v2321_v51 = vadd.f32 %v1889_v49, %v159_v50 }
 0x8ec   :  { %v162_v52 = vpop.f32.mrf.mxu1 }
 0x8ed   :  { %v2325_v53 = vadd.f32 %v1889_v49, %v162_v52 }
 0x8ef   :  { %v745_v54 = vadd.f32 %v743_v46, %v2325_v53 }
 0x8f1   :  { %v1836_v55 = vmul.f32 -1.442695, %v745_v54 }
 0x8f3   :  { %1915 = vpow2.f32 %v1836_v55 }
 0x8f9   :  { %v1916_v56 = vpop.eup %1915 }
 0x8fa   :  { %v749_v47 = vadd.f32 1.0, %v1916_v56 }
 0x8fc   :  { %1917 = vrcp.f32 %v749_v47  ;;  %vm755_vm0 = vweird.f32 %v749_v47  ;;  %v761_v61 = vand.u32 2147483648, %v749_v47  ;;  %v759_v1 = vand.u32 2147483647, %v749_v47 }
 0x8fe   :  { %v762_v3 = vor.u32 1.1754944e-38, %v761_v61  ;;  %vm760_vm9 = vcmp.eq.f32.partialorder %v759_v1, 8.507059e+37 }
 0x902   :  { %v1918_v57 = vpop.eup %1917 }
 0x903   :  { %v751_v58 = vmul.f32 %v1918_v57, %v749_v47  ;;  %vm756_vm7 = vweird.f32 %v1918_v57 }
 0x904   :  { %vm757_vm8 = vmor %vm755_vm0, %vm756_vm7 }
 0x905   :  { %v752_v59 = vsub.f32 1.0, %v751_v58 }
 0x907   :  { %v753_v60 = vmul.f32 %v1918_v57, %v752_v59 }
 0x909   :  { %v754_v62 = vadd.f32 %v1918_v57, %v753_v60 }
 0x90b   :  { %v758_v5 = vsel %vm757_vm8, %v1918_v57, %v754_v62 }
 0x90c   :  { %v763_v7 = vsel %vm760_vm9, %v762_v3, %v758_v5 }
 0x90d   :  { %v768_v4 = vmul.f32 %v766_v2, %v763_v7  ;;  %v775_v37 = vsub.f32 1.0, %v763_v7  ;;  %v781_v39 = vmul.f32 0.0, %v763_v7 }
 0x92b   :  { %v450_v48 = vpop.permute.xlu0 %449 }
 0x92c   :  { %1828 = vmatmul.msk.f32.vlgmr.msra.gmra.mxu2 %vm178_vm5, %v450_v48 }
 0x92d   :  { %870 = vmatpush.msra.mxu2 %v2258_v16 }
 0x92f   :  { %871 = vmatpush.msra.mxu2 %v2264_v19 }
 0x931   :  { %872 = vmatpush.msra.mxu2 %v2270_v22 }
 0x933   :  { %873 = vmatpush.msra.mxu2 %v2276_v25 }
 0x9af   :  { %v470_v63 = vpop.f32.mrf.mxu2 }
 0x9b0   :  { %v471_v0 = vadd.f32 %v2187_v18, %v470_v63 }
 0x9b2   :  { %494 = vrot.lane.b32.xlu1 %v471_v0, %s2053_s18  ;;  %v473_v8 = vadd.f32 %v471_v0, %v2332_v6 }
 0x9b4   :  { %v1829_v10 = vmul.f32 -1.442695, %v473_v8 }
 0x9b6   :  { %1919 = vpow2.f32 %v1829_v10 }
 0x9ba   :  { %770 = vrot.lane.b32.xlu1 %v768_v4, %s2053_s18 }
 0x9bc   :  { %v1920_v11 = vpop.eup %1919 }
 0x9bd   :  { %v477_v12 = vadd.f32 1.0, %v1920_v11 }
 0x9bf   :  { %1921 = vrcp.f32 %v477_v12  ;;  %v489_v24 = vand.u32 2147483648, %v477_v12  ;;  %vm483_vm11 = vweird.f32 %v477_v12  ;;  %v487_v26 = vand.u32 2147483647, %v477_v12 }
 0x9c1   :  { %v490_v21 = vor.u32 1.1754944e-38, %v489_v24  ;;  %vm488_vm13 = vcmp.eq.f32.partialorder %v487_v26, 8.507059e+37 }
 0x9c5   :  { %v1922_v13 = vpop.eup %1921 }
 0x9c6   :  { %v479_v14 = vmul.f32 %v1922_v13, %v477_v12  ;;  %vm484_vm10 = vweird.f32 %v1922_v13 }
 0x9c7   :  { %vm485_vm12 = vmor %vm483_vm11, %vm484_vm10 }
 0x9c8   :  { %v480_v15 = vsub.f32 1.0, %v479_v14 }
 0x9ca   :  { %v481_v23 = vmul.f32 %v1922_v13, %v480_v15 }
 0x9cc   :  { %v482_v20 = vadd.f32 %v1922_v13, %v481_v23 }
 0x9ce   :  { %v486_v27 = vsel %vm485_vm12, %v1922_v13, %v482_v20 }
 0x9cf   :  { %v491_v29 = vsel %vm488_vm13, %v490_v21, %v486_v27 }
 0x9d0   :  { %v504_v46 = vsub.f32 1.0, %v491_v29  ;;  %v511_v49 = vmul.f32 %v491_v29, %v448_v41 }
 0xa24   :  { %v495_v28 = vpop.permute.xlu1 %494 }
 0xa25   :  { %v497_v30 = vmul.f32 %v495_v28, %v491_v29 }
 0xa27   :  { %499 = vrot.lane.b32.xlu0 %v497_v30, %s2053_s18 }
 0xa2c   :  { %v771_v31 = vpop.permute.xlu1 %770 }
 0xa2d   :  { %v773_v32 = vadd.f32 %v771_v31, %v2325_v53 }
 0xa2f   :  { %1923 = vtanh.f32 %v773_v32 }
 0xa35   :  { %v1924_v33 = vpop.eup %1923 }
 0xa36   :  { %777 = vrot.lane.b32.xlu0 %v1924_v33, %s2054_s2 }
 0xa99   :  { %v500_v34 = vpop.permute.xlu0 %499 }
 0xa9a   :  { %v502_v35 = vadd.f32 %v500_v34, %v2332_v6 }
 0xa9c   :  { %1925 = vtanh.f32 %v502_v35 }
 0xaa2   :  { %v1926_v36 = vpop.eup %1925 }
 0xaa3   :  { %506 = vrot.lane.b32.xlu2 %v1926_v36, %s2054_s2 }
 0xaa8   :  { %v778_v38 = vpop.permute.xlu0 %777 }
 0xaa9   :  { %v780_v17 = vmul.f32 %v778_v38, %v775_v37 }
 0xaab   :  { %v2340_v44 = vadd.f32 %v781_v39, %v780_v17 }
 0xaad   :  { %v784_v45 = vrot.slane %v2340_v44, 6 }
 0xaaf   :  { %785 = vrot.lane.b32.xlu2 %v784_v45, %s2054_s2 }
 0xafd   :  { %v507_v48 = vpop.permute.xlu2 %506 }
 0xafe   :  { %v509_v50 = vmul.f32 %v507_v48, %v504_v46  ;;  %v848_v46 = vrot.slane %v2340_v44, 2 }
 0xb00   :  { %v2346_v52 = vadd.f32 %v511_v49, %v509_v50 }
 0xb02   :  { %514 = vrot.lane.b32.xlu1 %v2346_v52, %s2054_s2 }
 0xb09   :  { %v786_v54 = vpop.permute.xlu2 %785 }
 0xb0a   :  { %1837 = vmatmul.msk.f32.vlgmr.msrb.gmra.mxu1 %vm178_vm5, %v786_v54 }
 0xb74   :  { %v515_v55 = vpop.permute.xlu1 %514 }
 0xb75   :  { %1830 = vmatmul.msk.f32.vlgmr.msra.gmra.mxu3 %vm178_vm5, %v515_v55 }
 0xb76   :  { %939 = vmatpush.msra.mxu3 %v2258_v16 }
 0xb78   :  { %940 = vmatpush.msra.mxu3 %v2264_v19 }
 0xb7a   :  { %941 = vmatpush.msra.mxu3 %v2270_v22 }
 0xb7c   :  { %942 = vmatpush.msra.mxu3 %v2276_v25 }
 0xb87   :  { %v806_v40 = vpop.f32.mrf.mxu1 }
 0xb88   :  { %v807_v41 = vadd.f32 %v2311_v43, %v806_v40 }
 0xb8a   :  { %v810_v56 = vrot.slane %v807_v41, 4  ;;  %v577_v41 = vrot.slane %v2346_v52, 6 }
 0xb8c   :  { %832 = vrot.lane.b32.xlu1 %v810_v56, %s2053_s18  ;;  %v812_v47 = vadd.f32 %v810_v56, %v2325_v53 }
 0xb8e   :  { %v1838_v57 = vmul.f32 -1.442695, %v812_v47 }
 0xb90   :  { %1927 = vpow2.f32 %v1838_v57 }
 0xb96   :  { %v1928_v58 = vpop.eup %1927 }
 0xb97   :  { %v816_v59 = vadd.f32 1.0, %v1928_v58 }
 0xb99   :  { %1929 = vrcp.f32 %v816_v59  ;;  %v828_v7 = vand.u32 2147483648, %v816_v59  ;;  %vm822_vm2 = vweird.f32 %v816_v59  ;;  %v826_v2 = vand.u32 2147483647, %v816_v59 }
 0xb9b   :  { %v829_v10 = vor.u32 1.1754944e-38, %v828_v7  ;;  %vm827_vm4 = vcmp.eq.f32.partialorder %v826_v2, 8.507059e+37 }
 0xb9f   :  { %v1930_v60 = vpop.eup %1929 }
 0xba0   :  { %v818_v61 = vmul.f32 %v1930_v60, %v816_v59  ;;  %vm823_vm1 = vweird.f32 %v1930_v60 }
 0xba1   :  { %vm824_vm3 = vmor %vm822_vm2, %vm823_vm1 }
 0xba2   :  { %v819_v62 = vsub.f32 1.0, %v818_v61 }
 0xba4   :  { %v820_v1 = vmul.f32 %v1930_v60, %v819_v62 }
 0xba6   :  { %v821_v5 = vadd.f32 %v1930_v60, %v820_v1 }
 0xba8   :  { %v825_v4 = vsel %vm824_vm3, %v1930_v60, %v821_v5 }
 0xba9   :  { %v830_v11 = vsel %vm827_vm4, %v829_v10, %v825_v4 }
 0xbaa   :  { %v842_v45 = vsub.f32 1.0, %v830_v11  ;;  %v850_v49 = vmul.f32 %v848_v46, %v830_v11 }
 0xbf8   :  { %v535_v63 = vpop.f32.mrf.mxu3 }
 0xbf9   :  { %v536_v3 = vadd.f32 %v2187_v18, %v535_v63 }
 0xbfb   :  { %v539_v0 = vrot.slane %v536_v3, 6 }
 0xbfd   :  { %561 = vrot.lane.b32.xlu0 %v539_v0, %s2053_s18  ;;  %v541_v13 = vadd.f32 %v539_v0, %v2332_v6 }
 0xbfe   :  { %v833_v8 = vpop.permute.xlu1 %832 }
 0xbff   :  { %v835_v12 = vmul.f32 %v833_v8, %v830_v11  ;;  %v1831_v14 = vmul.f32 -1.442695, %v541_v13 }
 0xc01   :  { %1931 = vpow2.f32 %v1831_v14 }
 0xc05   :  { %837 = vrot.lane.b32.xlu0 %v835_v12, %s2053_s18 }
 0xc07   :  { %v1932_v15 = vpop.eup %1931 }
 0xc08   :  { %v545_v23 = vadd.f32 1.0, %v1932_v15 }
 0xc0a   :  { %1933 = vrcp.f32 %v545_v23  ;;  %v557_v28 = vand.u32 2147483648, %v545_v23  ;;  %vm551_vm7 = vweird.f32 %v545_v23  ;;  %v555_v29 = vand.u32 2147483647, %v545_v23 }
 0xc0c   :  { %v558_v31 = vor.u32 1.1754944e-38, %v557_v28  ;;  %vm556_vm9 = vcmp.eq.f32.partialorder %v555_v29, 8.507059e+37 }
 0xc10   :  { %v1934_v20 = vpop.eup %1933 }
 0xc11   :  { %v547_v24 = vmul.f32 %v1934_v20, %v545_v23  ;;  %vm552_vm0 = vweird.f32 %v1934_v20 }
 0xc12   :  { %vm553_vm8 = vmor %vm551_vm7, %vm552_vm0 }
 0xc13   :  { %v548_v26 = vsub.f32 1.0, %v547_v24 }
 0xc15   :  { %v549_v27 = vmul.f32 %v1934_v20, %v548_v26 }
 0xc17   :  { %v550_v21 = vadd.f32 %v1934_v20, %v549_v27 }
 0xc19   :  { %v554_v30 = vsel %vm553_vm8, %v1934_v20, %v550_v21 }
 0xc1a   :  { %v559_v33 = vsel %vm556_vm9, %v558_v31, %v554_v30 }
 0xc1b   :  { %v571_v40 = vsub.f32 1.0, %v559_v33  ;;  %v579_v47 = vmul.f32 %v577_v41, %v559_v33 }
 0xc6f   :  { %v562_v32 = vpop.permute.xlu0 %561 }
 0xc70   :  { %v564_v34 = vmul.f32 %v562_v32, %v559_v33 }
 0xc72   :  { %566 = vrot.lane.b32.xlu2 %v564_v34, %s2053_s18 }
 0xc77   :  { %v838_v35 = vpop.permute.xlu0 %837 }
 0xc78   :  { %v840_v36 = vadd.f32 %v838_v35, %v2325_v53 }
 0xc7a   :  { %1935 = vtanh.f32 %v840_v36 }
 0xc80   :  { %v1936_v37 = vpop.eup %1935 }
 0xc81   :  { %844 = vrot.lane.b32.xlu2 %v1936_v37, %s2054_s2 }
 0xccc   :  { %v567_v38 = vpop.permute.xlu2 %566 }
 0xccd   :  { %v569_v39 = vadd.f32 %v567_v38, %v2332_v6 }
 0xccf   :  { %1937 = vtanh.f32 %v569_v39 }
 0xcd5   :  { %v1938_v17 = vpop.eup %1937 }
 0xcd6   :  { %573 = vrot.lane.b32.xlu1 %v1938_v17, %s2054_s2 }
 0xcdb   :  { %v845_v48 = vpop.permute.xlu2 %844 }
 0xcdc   :  { %v847_v50 = vmul.f32 %v845_v48, %v842_v45 }
 0xcde   :  { %v2369_v54 = vadd.f32 %v850_v49, %v847_v50 }
 0xce0   :  { %v853_v55 = vrot.slane %v2369_v54, 4 }
 0xce2   :  { %854 = vrot.lane.b32.xlu1 %v853_v55, %s2054_s2 }
 0xd48   :  { %v574_v56 = vpop.permute.xlu1 %573 }
 0xd49   :  { %v576_v57 = vmul.f32 %v574_v56, %v571_v40 }
 0xd4b   :  { %v2374_v58 = vadd.f32 %v579_v47, %v576_v57 }
 0xd4d   :  { %v582_v59 = vrot.slane %v2374_v58, 2  ;;  %v646_v24 = vrot.slane %v2374_v58, 6 }
 0xd4f   :  { %583 = vrot.lane.b32.xlu0 %v582_v59, %s2054_s2 }
 0xd54   :  { %v855_v61 = vpop.permute.xlu1 %854 }
 0xdc1   :  { %v584_v60 = vpop.permute.xlu0 %583 }
 0xdc2   :  { %1832 = vmatmul.msk.f32.vlgmr.msrb.gmra.mxu2 %vm178_vm5, %v584_v60 }
 0xdc3   :  { %1142 = vmatpush.msrb.mxu2 %v2258_v16 }
 0xdc5   :  { %1143 = vmatpush.msrb.mxu2 %v2264_v19 }
 0xdc7   :  { %1144 = vmatpush.msrb.mxu2 %v2270_v22 }
 0xdc9   :  { %1145 = vmatpush.msrb.mxu2 %v2276_v25 }
 0xdca   :  { %1839 = vmatmul.msk.f32.vlgmr.msra.gmra.mxu2 %vm178_vm5, %v855_v61 }
 0xe45   :  { %v604_v62 = vpop.f32.mrf.mxu2 }
 0xe46   :  { %v605_v1 = vadd.f32 %v2187_v18, %v604_v62  ;;  %v1265_v62 = vsel %vm1259_vm14, %v2346_v52, %v2374_v58 }
 0xe48   :  { %v608_v63 = vrot.slane %v605_v1, 4 }
 0xe4a   :  { %v610_v3 = vadd.f32 %v608_v63, %v2332_v6  ;;  %630 = vrot.lane.b32.xlu2 %v608_v63, %s2053_s18 }
 0xe4c   :  { %v1833_v0 = vmul.f32 -1.442695, %v610_v3 }
 0xe4d   :  { %v875_v5 = vpop.f32.mrf.mxu2 }
 0xe4e   :  { %1939 = vpow2.f32 %v1833_v0  ;;  %v876_v7 = vadd.f32 %v2311_v43, %v875_v5  ;;  %v917_v0 = vrot.slane %v2369_v54, 2 }
 0xe50   :  { %v879_v2 = vrot.slane %v876_v7, 6 }
 0xe52   :  { %901 = vrot.lane.b32.xlu0 %v879_v2, %s2053_s18  ;;  %v881_v21 = vadd.f32 %v879_v2, %v2325_v53 }
 0xe54   :  { %v1940_v4 = vpop.eup %1939  ;;  %v1840_v28 = vmul.f32 -1.442695, %v881_v21 }
 0xe55   :  { %v614_v8 = vadd.f32 1.0, %v1940_v4 }
 0xe57   :  { %1941 = vrcp.f32 %v614_v8  ;;  %v626_v18 = vand.u32 2147483648, %v614_v8  ;;  %v624_v14 = vand.u32 2147483647, %v614_v8  ;;  %vm620_vm11 = vweird.f32 %v614_v8 }
 0xe58   :  { %1943 = vpow2.f32 %v1840_v28 }
 0xe59   :  { %v627_v23 = vor.u32 1.1754944e-38, %v626_v18  ;;  %vm625_vm13 = vcmp.eq.f32.partialorder %v624_v14, 8.507059e+37 }
 0xe5d   :  { %v1942_v10 = vpop.eup %1941 }
 0xe5e   :  { %v616_v11 = vmul.f32 %v1942_v10, %v614_v8  ;;  %vm621_vm10 = vweird.f32 %v1942_v10  ;;  %v1944_v29 = vpop.eup %1943 }
 0xe5f   :  { %vm622_vm12 = vmor %vm620_vm11, %vm621_vm10  ;;  %v885_v30 = vadd.f32 1.0, %v1944_v29 }
 0xe60   :  { %v617_v12 = vsub.f32 1.0, %v616_v11 }
 0xe61   :  { %1945 = vrcp.f32 %v885_v30  ;;  %v897_v38 = vand.u32 2147483648, %v885_v30  ;;  %vm891_vm2 = vweird.f32 %v885_v30  ;;  %v895_v39 = vand.u32 2147483647, %v885_v30 }
 0xe62   :  { %v618_v13 = vmul.f32 %v1942_v10, %v617_v12 }
 0xe63   :  { %v898_v45 = vor.u32 1.1754944e-38, %v897_v38  ;;  %vm896_vm4 = vcmp.eq.f32.partialorder %v895_v39, 8.507059e+37 }
 0xe64   :  { %v619_v15 = vadd.f32 %v1942_v10, %v618_v13 }
 0xe66   :  { %v623_v20 = vsel %vm622_vm12, %v1942_v10, %v619_v15 }
 0xe67   :  { %v628_v26 = vsel %vm625_vm13, %v627_v23, %v623_v20  ;;  %v1946_v33 = vpop.eup %1945 }
 0xe68   :  { %v648_v27 = vmul.f32 %v646_v24, %v628_v26  ;;  %v887_v34 = vmul.f32 %v1946_v33, %v885_v30  ;;  %vm892_vm1 = vweird.f32 %v1946_v33  ;;  %v640_v57 = vsub.f32 1.0, %v628_v26 }
 0xe69   :  { %vm893_vm3 = vmor %vm891_vm2, %vm892_vm1 }
 0xe6a   :  { %v888_v35 = vsub.f32 1.0, %v887_v34 }
 0xe6c   :  { %v889_v36 = vmul.f32 %v1946_v33, %v888_v35 }
 0xe6e   :  { %v890_v37 = vadd.f32 %v1946_v33, %v889_v36 }
 0xe70   :  { %v894_v17 = vsel %vm893_vm3, %v1946_v33, %v890_v37 }
 0xe71   :  { %v899_v48 = vsel %vm896_vm4, %v898_v45, %v894_v17 }
 0xe72   :  { %v911_v3 = vsub.f32 1.0, %v899_v48  ;;  %v919_v7 = vmul.f32 %v917_v0, %v899_v48 }
 0xea4   :  { %v631_v31 = vpop.permute.xlu2 %630 }
 0xea5   :  { %v633_v32 = vmul.f32 %v631_v31, %v628_v26 }
 0xea7   :  { %635 = vrot.lane.b32.xlu1 %v633_v32, %s2053_s18 }
 0xec4   :  { %v902_v46 = vpop.permute.xlu0 %901 }
 0xec5   :  { %v904_v49 = vmul.f32 %v902_v46, %v899_v48 }
 0xec7   :  { %906 = vrot.lane.b32.xlu2 %v904_v49, %s2053_s18 }
 0xf19   :  { %v636_v50 = vpop.permute.xlu1 %635 }
 0xf1a   :  { %v638_v55 = vadd.f32 %v636_v50, %v2332_v6 }
 0xf1c   :  { %1947 = vtanh.f32 %v638_v55 }
 0xf21   :  { %v907_v40 = vpop.permute.xlu2 %906 }
 0xf22   :  { %v1948_v41 = vpop.eup %1947  ;;  %v909_v56 = vadd.f32 %v907_v40, %v2325_v53 }
 0xf23   :  { %642 = vrot.lane.b32.xlu0 %v1948_v41, %s2054_s2 }
 0xf24   :  { %1949 = vtanh.f32 %v909_v56 }
 0xf2a   :  { %v1950_v47 = vpop.eup %1949 }
 0xf2b   :  { %913 = vrot.lane.b32.xlu1 %v1950_v47, %s2054_s2 }
 0xf95   :  { %v643_v59 = vpop.permute.xlu0 %642 }
 0xf96   :  { %v645_v60 = vmul.f32 %v643_v59, %v640_v57 }
 0xf98   :  { %v2397_v61 = vadd.f32 %v648_v27, %v645_v60 }
 0xf9a   :  { %v651_v1 = vrot.slane %v2397_v61, 4  ;;  %v2405_v63 = vsel %vm1261_vm15, %v1265_v62, %v2397_v61 }
 0xf9c   :  { %652 = vrot.lane.b32.xlu2 %v651_v1, %s2054_s2 }
 0xf9d   :  { %v914_v5 = vpop.permute.xlu1 %913 }
 0xf9e   :  { %v916_v2 = vmul.f32 %v914_v5, %v911_v3 }
 0xfa0   :  { %v2409_v4 = vadd.f32 %v919_v7, %v916_v2 }
 0xfa2   :  { %v922_v8 = vrot.slane %v2409_v4, 2 }
 0xfa4   :  { %923 = vrot.lane.b32.xlu0 %v922_v8, %s2054_s2 }
 0xff6   :  { %v653_v52 = vpop.permute.xlu2 %652 }
 0xff7   :  { %1834 = vmatmul.msk.f32.vlgmr.msrb.gmra.mxu3 %vm178_vm5, %v653_v52 }
 0xff8   :  { %1211 = vmatpush.msrb.mxu3 %v2258_v16 }
 0xffa   :  { %1212 = vmatpush.msrb.mxu3 %v2264_v19 }
 0xffc   :  { %1213 = vmatpush.msrb.mxu3 %v2270_v22 }
 0xffe   :  { %1214 = vmatpush.msrb.mxu3 %v2276_v25 }
0x1016   :  { %v924_v58 = vpop.permute.xlu0 %923 }
0x1017   :  { %1841 = vmatmul.msk.f32.vlgmr.msra.gmra.mxu3 %vm178_vm5, %v924_v58 }
0x107a   :  { %v2419_v10 = vpop.f32.mrf.mxu3 }
0x109a   :  { %v944_v11 = vpop.f32.mrf.mxu3 }
0x109b   :  { %v945_v12 = vadd.f32 %v2311_v43, %v944_v11 }
0x109d   :  { %968 = vrot.lane.b32.xlu1 %v945_v12, %s2053_s18  ;;  %v947_v18 = vadd.f32 %v945_v12, %v2325_v53 }
0x109f   :  { %v1842_v13 = vmul.f32 -1.442695, %v947_v18 }
0x10a1   :  { %1951 = vpow2.f32 %v1842_v13 }
0x10a7   :  { %v1952_v16 = vpop.eup %1951 }
0x10a8   :  { %v951_v19 = vadd.f32 1.0, %v1952_v16 }
0x10aa   :  { %1953 = vrcp.f32 %v951_v19  ;;  %v963_v20 = vand.u32 2147483648, %v951_v19  ;;  %vm957_vm7 = vweird.f32 %v951_v19  ;;  %v961_v24 = vand.u32 2147483647, %v951_v19 }
0x10ac   :  { %v964_v27 = vor.u32 1.1754944e-38, %v963_v20  ;;  %vm962_vm9 = vcmp.eq.f32.partialorder %v961_v24, 8.507059e+37 }
0x10b0   :  { %v1954_v22 = vpop.eup %1953 }
0x10b1   :  { %v953_v14 = vmul.f32 %v1954_v22, %v951_v19  ;;  %vm958_vm0 = vweird.f32 %v1954_v22 }
0x10b2   :  { %vm959_vm8 = vmor %vm957_vm7, %vm958_vm0 }
0x10b3   :  { %v954_v25 = vsub.f32 1.0, %v953_v14 }
0x10b5   :  { %v955_v15 = vmul.f32 %v1954_v22, %v954_v25 }
0x10b7   :  { %v956_v23 = vadd.f32 %v1954_v22, %v955_v15 }
0x10b9   :  { %v960_v26 = vsel %vm959_vm8, %v1954_v22, %v956_v23 }
0x10ba   :  { %v965_v28 = vsel %vm962_vm9, %v964_v27, %v960_v26 }
0x10bb   :  { %v978_v33 = vsub.f32 1.0, %v965_v28  ;;  %v985_v35 = vmul.f32 %v965_v28, %v922_v8 }
0x110f   :  { %v969_v21 = vpop.permute.xlu1 %968 }
0x1110   :  { %v971_v29 = vmul.f32 %v969_v21, %v965_v28 }
0x1112   :  { %973 = vrot.lane.b32.xlu2 %v971_v29, %s2053_s18 }
0x116c   :  { %v974_v30 = vpop.permute.xlu2 %973 }
0x116d   :  { %v976_v31 = vadd.f32 %v974_v30, %v2325_v53 }
0x116f   :  { %1955 = vtanh.f32 %v976_v31 }
0x1175   :  { %v1956_v32 = vpop.eup %1955 }
0x1176   :  { %980 = vrot.lane.b32.xlu0 %v1956_v32, %s2054_s2 }
0x11e8   :  { %v981_v34 = vpop.permute.xlu0 %980 }
0x11e9   :  { %v983_v36 = vmul.f32 %v981_v34, %v978_v33 }
0x11eb   :  { %v2427_v37 = vadd.f32 %v985_v35, %v983_v36 }
0x11ed   :  { %988 = vrot.lane.b32.xlu1 %v2427_v37, %s2054_s2  ;;  %v1051_v62 = vrot.slane %v2427_v37, 2 }
0x125f   :  { %v989_v38 = vpop.permute.xlu1 %988 }
0x1260   :  { %1843 = vmatmul.msk.f32.vlgmr.msra.gmra.mxu0 %vm178_vm5, %v989_v38 }
0x12dd   :  { %v1009_v39 = vpop.f32.mrf.mxu0 }
0x12de   :  { %v1010_v17 = vadd.f32 %v2311_v43, %v1009_v39 }
0x12e0   :  { %v1013_v53 = vrot.slane %v1010_v17, 2 }
0x12e2   :  { %v1015_v45 = vadd.f32 %v1013_v53, %v2321_v51  ;;  %1035 = vrot.lane.b32.xlu2 %v1013_v53, %s2053_s18 }
0x12e4   :  { %v1844_v46 = vmul.f32 -1.442695, %v1015_v45 }
0x12e6   :  { %1957 = vpow2.f32 %v1844_v46 }
0x12ec   :  { %v1958_v48 = vpop.eup %1957 }
0x12ed   :  { %v1019_v49 = vadd.f32 1.0, %v1958_v48 }
0x12ef   :  { %1959 = vrcp.f32 %v1019_v49  ;;  %v1031_v41 = vand.u32 2147483648, %v1019_v49  ;;  %v1029_v47 = vand.u32 2147483647, %v1019_v49  ;;  %vm1025_vm11 = vweird.f32 %v1019_v49 }
0x12f1   :  { %v1032_v59 = vor.u32 1.1754944e-38, %v1031_v41  ;;  %vm1030_vm13 = vcmp.eq.f32.partialorder %v1029_v47, 8.507059e+37 }
0x12f5   :  { %v1960_v50 = vpop.eup %1959 }
0x12f6   :  { %v1021_v55 = vmul.f32 %v1960_v50, %v1019_v49  ;;  %vm1026_vm10 = vweird.f32 %v1960_v50 }
0x12f7   :  { %vm1027_vm12 = vmor %vm1025_vm11, %vm1026_vm10  ;;  %vm1331_vm10 = vcmask 64512  }
0x12f8   :  { %v1022_v40 = vsub.f32 1.0, %v1021_v55 }
0x12fa   :  { %v1023_v56 = vmul.f32 %v1960_v50, %v1022_v40 }
0x12fc   :  { %v1024_v57 = vadd.f32 %v1960_v50, %v1023_v56 }
0x12fe   :  { %v1028_v60 = vsel %vm1027_vm12, %v1960_v50, %v1024_v57 }
0x12ff   :  { %v1033_v1 = vsel %vm1030_vm13, %v1032_v59, %v1028_v60 }
0x1300   :  { %v1053_v3 = vmul.f32 %v1051_v62, %v1033_v1  ;;  %v1045_v52 = vsub.f32 1.0, %v1033_v1 }
0x133c   :  { %v1036_v0 = vpop.permute.xlu2 %1035 }
0x133d   :  { %v1038_v5 = vmul.f32 %v1036_v0, %v1033_v1 }
0x133f   :  { %1040 = vrot.lane.b32.xlu0 %v1038_v5, %s2053_s18 }
0x13b1   :  { %v1041_v7 = vpop.permute.xlu0 %1040 }
0x13b2   :  { %v1043_v2 = vadd.f32 %v1041_v7, %v2321_v51 }
0x13b4   :  { %1961 = vtanh.f32 %v1043_v2 }
0x13ba   :  { %v1962_v8 = vpop.eup %1961 }
0x13bb   :  { %1047 = vrot.lane.b32.xlu1 %v1962_v8, %s2054_s2 }
0x142d   :  { %v1048_v58 = vpop.permute.xlu1 %1047 }
0x142e   :  { %v1050_v11 = vmul.f32 %v1048_v58, %v1045_v52 }
0x1430   :  { %v2439_v12 = vadd.f32 %v1053_v3, %v1050_v11 }
0x1432   :  { %v1056_v18 = vrot.slane %v2439_v12, 6  ;;  %v1120_v17 = vrot.slane %v2439_v12, 2 }
0x1434   :  { %1057 = vrot.lane.b32.xlu2 %v1056_v18, %s2054_s2 }
0x148e   :  { %v1058_v13 = vpop.permute.xlu2 %1057 }
0x148f   :  { %1845 = vmatmul.msk.f32.vlgmr.msra.gmra.mxu1 %vm178_vm5, %v1058_v13 }
0x150c   :  { %v1078_v16 = vpop.f32.mrf.mxu1 }
0x150d   :  { %v1079_v19 = vadd.f32 %v2311_v43, %v1078_v16 }
0x150f   :  { %v1082_v22 = vrot.slane %v1079_v19, 4 }
0x1511   :  { %1104 = vrot.lane.b32.xlu0 %v1082_v22, %s2053_s18  ;;  %v1084_v14 = vadd.f32 %v1082_v22, %v2321_v51 }
0x1513   :  { %v1846_v25 = vmul.f32 -1.442695, %v1084_v14 }
0x1515   :  { %1963 = vpow2.f32 %v1846_v25 }
0x151b   :  { %v1964_v15 = vpop.eup %1963 }
0x151c   :  { %v1088_v23 = vadd.f32 1.0, %v1964_v15 }
0x151e   :  { %1965 = vrcp.f32 %v1088_v23  ;;  %v1100_v28 = vand.u32 2147483648, %v1088_v23  ;;  %vm1094_vm2 = vweird.f32 %v1088_v23  ;;  %v1098_v29 = vand.u32 2147483647, %v1088_v23 }
0x1520   :  { %v1101_v31 = vor.u32 1.1754944e-38, %v1100_v28  ;;  %vm1099_vm4 = vcmp.eq.f32.partialorder %v1098_v29, 8.507059e+37 }
0x1524   :  { %v1966_v20 = vpop.eup %1965 }
0x1525   :  { %v1090_v24 = vmul.f32 %v1966_v20, %v1088_v23  ;;  %vm1095_vm1 = vweird.f32 %v1966_v20 }
0x1526   :  { %vm1096_vm3 = vmor %vm1094_vm2, %vm1095_vm1 }
0x1527   :  { %v1091_v26 = vsub.f32 1.0, %v1090_v24 }
0x1529   :  { %v1092_v27 = vmul.f32 %v1966_v20, %v1091_v26 }
0x152b   :  { %v1093_v21 = vadd.f32 %v1966_v20, %v1092_v27 }
0x152d   :  { %v1097_v30 = vsel %vm1096_vm3, %v1966_v20, %v1093_v21  ;;  %vm1366_vm3 = vcmask 80896  }
0x152e   :  { %v1102_v33 = vsel %vm1099_vm4, %v1101_v31, %v1097_v30  ;;  %v1330_v31 = vld [vmem:[%s2701_s10] sm:$0xff]  ;;  %vm1284_vm4 = vcmask 523264  }
0x152f   :  { %v1114_v39 = vsub.f32 1.0, %v1102_v33  ;;  %v1122_v45 = vmul.f32 %v1120_v17, %v1102_v33  ;;  %1353 = vmatpush.msrb.mxu1 %v1330_v31 }
0x1583   :  { %v1105_v32 = vpop.permute.xlu0 %1104 }
0x1584   :  { %v1107_v34 = vmul.f32 %v1105_v32, %v1102_v33  ;;  %v1329_v33 = vld [vmem:[%s2703_s12 + $0x8] sm:$0x3] }
0x1586   :  { %1109 = vrot.lane.b32.xlu1 %v1107_v34, %s2053_s18 }
0x15f8   :  { %v1110_v35 = vpop.permute.xlu1 %1109 }
0x15f9   :  { %v1112_v36 = vadd.f32 %v1110_v35, %v2321_v51 }
0x15fb   :  { %1967 = vtanh.f32 %v1112_v36 }
0x1601   :  { %v1968_v38 = vpop.eup %1967 }
0x1602   :  { %1116 = vrot.lane.b32.xlu2 %v1968_v38, %s2054_s2 }
0x165c   :  { %v1117_v53 = vpop.permute.xlu2 %1116 }
0x165d   :  { %v1119_v46 = vmul.f32 %v1117_v53, %v1114_v39 }
0x165f   :  { %v2451_v48 = vadd.f32 %v1122_v45, %v1119_v46 }
0x1661   :  { %v1125_v49 = vrot.slane %v2451_v48, 4  ;;  %v1189_v22 = vrot.slane %v2451_v48, 2 }
0x1663   :  { %1126 = vrot.lane.b32.xlu0 %v1125_v49, %s2054_s2 }
0x16d5   :  { %v1127_v50 = vpop.permute.xlu0 %1126 }
0x16d6   :  { %1847 = vmatmul.msk.f32.vlgmr.msrb.gmra.mxu2 %vm178_vm5, %v1127_v50  ;;  %v1294_v50 = vld [vmem:[%s2700_s9 + $0x38] sm:$0xff] }
0x16d7   :  { %1313 = vmatpush.msrb.mxu0 %v1294_v50 }
0x1759   :  { %v1147_v55 = vpop.f32.mrf.mxu2 }
0x175a   :  { %v1148_v40 = vadd.f32 %v2311_v43, %v1147_v55  ;;  %v1293_v55 = vld [vmem:[%s2700_s9 + $0x30] sm:$0xff] }
0x175b   :  { %1314 = vmatpush.msrb.mxu0 %v1293_v55 }
0x175c   :  { %v1151_v41 = vrot.slane %v1148_v40, 6  ;;  %v1292_v40 = vld [vmem:[%s2700_s9 + $0x28] sm:$0xff] }
0x175d   :  { %1315 = vmatpush.msrb.mxu0 %v1292_v40 }
0x175e   :  { %1173 = vrot.lane.b32.xlu1 %v1151_v41, %s2053_s18  ;;  %v1153_v56 = vadd.f32 %v1151_v41, %v2321_v51  ;;  %v1291_v41 = vld [vmem:[%s2700_s9 + $0x20] sm:$0xff] }
0x175f   :  { %1316 = vmatpush.msrb.mxu0 %v1291_v41 }
0x1760   :  { %v1848_v47 = vmul.f32 -1.442695, %v1153_v56  ;;  %v1290_v56 = vld [vmem:[%s2700_s9 + $0x18] sm:$0xff] }
0x1761   :  { %1317 = vmatpush.msrb.mxu0 %v1290_v56 }
0x1762   :  { %1969 = vpow2.f32 %v1848_v47  ;;  %v1361_v47 = vlaneseq }
0x1768   :  { %v1970_v57 = vpop.eup %1969 }
0x1769   :  { %v1157_v59 = vadd.f32 1.0, %v1970_v57 }
0x176b   :  { %1971 = vrcp.f32 %v1157_v59  ;;  %v1169_v5 = vand.u32 2147483648, %v1157_v59  ;;  %vm1163_vm7 = vweird.f32 %v1157_v59  ;;  %v1167_v7 = vand.u32 2147483647, %v1157_v59 }
0x176d   :  { %v1170_v8 = vor.u32 1.1754944e-38, %v1169_v5  ;;  %vm1168_vm9 = vcmp.eq.f32.partialorder %v1167_v7, 8.507059e+37 }
0x1771   :  { %v1972_v60 = vpop.eup %1971 }
0x1772   :  { %v1159_v62 = vmul.f32 %v1972_v60, %v1157_v59  ;;  %vm1164_vm0 = vweird.f32 %v1972_v60  ;;  %v1289_v59 = vld [vmem:[%s2700_s9 + $0x10] sm:$0xff] }
0x1773   :  { %vm1165_vm8 = vmor %vm1163_vm7, %vm1164_vm0  ;;  %1318 = vmatpush.msrb.mxu0 %v1289_v59  ;;  %vm1394_vm0 = vcmask 66560  }
0x1774   :  { %v1160_v1 = vsub.f32 1.0, %v1159_v62  ;;  %v2508_v62 = vand.u32 127, %v1361_v47 }
0x1776   :  { %v1161_v3 = vmul.f32 %v1972_v60, %v1160_v1  ;;  %v1287_v1 = vld [vmem:[%s2700_s9] sm:$0xff]  ;;  %vm1363_vm2 = vcmp.eq.s32.totalorder %v2508_v62, 9 }
0x1778   :  { %v1162_v0 = vadd.f32 %v1972_v60, %v1161_v3 }
0x177a   :  { %v1166_v2 = vsel %vm1165_vm8, %v1972_v60, %v1162_v0  ;;  %v1288_v60 = vld [vmem:[%s2700_s9 + $0x8] sm:$0xff]  ;;  %v1855_v0 = vsel %vm1363_vm2, 1.0, %v2052_v9 }
0x177b   :  { %v1171_v58 = vsel %vm1168_vm9, %v1170_v8, %v1166_v2  ;;  %1319 = vmatpush.msrb.mxu0 %v1288_v60 }
0x177c   :  { %v1183_v19 = vsub.f32 1.0, %v1171_v58  ;;  %v1191_v25 = vmul.f32 %v1189_v22, %v1171_v58 }
0x177d   :  { %1320 = vmatpush.msrb.mxu0 %v1287_v1 }
0x17d0   :  { %v1174_v52 = vpop.permute.xlu1 %1173 }
0x17d1   :  { %v1176_v11 = vmul.f32 %v1174_v52, %v1171_v58 }
0x17d3   :  { %1178 = vrot.lane.b32.xlu2 %v1176_v11, %s2053_s18 }
0x182d   :  { %v1179_v18 = vpop.permute.xlu2 %1178 }
0x182e   :  { %v1181_v13 = vadd.f32 %v1179_v18, %v2321_v51 }
0x1830   :  { %1973 = vtanh.f32 %v1181_v13 }
0x1836   :  { %v1974_v16 = vpop.eup %1973 }
0x1837   :  { %1185 = vrot.lane.b32.xlu0 %v1974_v16, %s2054_s2 }
0x18a9   :  { %v1186_v14 = vpop.permute.xlu0 %1185 }
0x18aa   :  { %v1188_v15 = vmul.f32 %v1186_v14, %v1183_v19  ;;  %v2558_v14 = vld [vmem:[%s2702_s11] ss:$0 sm:$0xff] }
0x18ac   :  { %v2463_v23 = vadd.f32 %v1191_v25, %v1188_v15 }
0x18ae   :  { %v1194_v20 = vrot.slane %v2463_v23, 2 }
0x18b0   :  { %1195 = vrot.lane.b32.xlu1 %v1194_v20, %s2054_s2 }
0x1922   :  { %v1196_v24 = vpop.permute.xlu1 %1195 }
0x1923   :  { %1849 = vmatmul.msk.f32.vlgmr.msrb.gmra.mxu3 %vm178_vm5, %v1196_v24 }
0x19a6   :  { %v1216_v26 = vpop.f32.mrf.mxu3 }
0x19a7   :  { %v1217_v27 = vadd.f32 %v2311_v43, %v1216_v26  ;;  %v1328_v43 = vld [vmem:[%s2703_s12] sm:$0xff] }
0x19a8   :  { %1853 = vmatmul.msk.f32.vlgmr.msrb.gmra.mxu1 %vm1331_vm10, %v1328_v43 }
0x19a9   :  { %1240 = vrot.lane.b32.xlu2 %v1217_v27, %s2053_s18  ;;  %v1219_v21 = vadd.f32 %v1217_v27, %v2321_v51 }
0x19ab   :  { %v1850_v28 = vmul.f32 -1.442695, %v1219_v21 }
0x19ad   :  { %1975 = vpow2.f32 %v1850_v28 }
0x19b0   :  { %1854 = vmatmul.msk.f32.gmra.mxu1 %vm1331_vm10, %v1329_v33  ;;  %vm1445_vm10 = vcmask 68610  }
0x19b1   :  { %1276 = vrot.lane.b32.xlu2 %v2297_v42, %s2054_s2 }
0x19b3   :  { %v1976_v29 = vpop.eup %1975 }
0x19b4   :  { %v1223_v30 = vadd.f32 1.0, %v1976_v29 }
0x19b6   :  { %1977 = vrcp.f32 %v1223_v30  ;;  %v1235_v38 = vand.u32 2147483648, %v1223_v30  ;;  %vm1229_vm12 = vweird.f32 %v1223_v30  ;;  %v1233_v39 = vand.u32 2147483647, %v1223_v30 }
0x19b8   :  { %v1236_v53 = vor.u32 1.1754944e-38, %v1235_v38  ;;  %vm1234_vm1 = vcmp.eq.f32.partialorder %v1233_v39, 8.507059e+37 }
0x19bc   :  { %v1978_v32 = vpop.eup %1977 }
0x19bd   :  { %v1225_v42 = vmul.f32 %v1978_v32, %v1223_v30  ;;  %vm1230_vm11 = vweird.f32 %v1978_v32 }
0x19be   :  { %vm1231_vm13 = vmor %vm1229_vm12, %vm1230_vm11 }
0x19bf   :  { %v1226_v34 = vsub.f32 1.0, %v1225_v42 }
0x19c1   :  { %v1227_v35 = vmul.f32 %v1978_v32, %v1226_v34 }
0x19c3   :  { %v1228_v36 = vadd.f32 %v1978_v32, %v1227_v35 }
0x19c5   :  { %v1232_v17 = vsel %vm1231_vm13, %v1978_v32, %v1228_v36 }
0x19c6   :  { %v1237_v46 = vsel %vm1234_vm1, %v1236_v53, %v1232_v17  ;;  %vm1497_vm1 = vcmask 70660  }
0x19c7   :  { %v1250_v8 = vsub.f32 1.0, %v1237_v46  ;;  %v1257_v58 = vmul.f32 %v1237_v46, %v1194_v20 }
0x1a03   :  { %v1241_v45 = vpop.permute.xlu2 %1240 }
0x1a04   :  { %v1243_v49 = vmul.f32 %v1241_v45, %v1237_v46 }
0x1a06   :  { %1245 = vrot.lane.b32.xlu0 %v1243_v49, %s2053_s18 }
0x1a0b   :  { %v1277_v16 = vpop.permute.xlu2 %1276 }
0x1a25   :  { %v2500_v57 = vpop.f32.mrf.mxu1 }
0x1a2d   :  { %v2514_v3 = vpop.f32.mrf.mxu1 }
0x1a2e   :  { %1856 = vmatpush.msk.msra.mxu2 %vm1259_vm14, %v2514_v3  ;;  %1859 = vmatpush.msk.msra.mxu3 %vm1259_vm14, %v2514_v3 }
0x1a2f   :  { %1868 = vmatpush.msk.msra.mxu1 %vm1259_vm14, %v2514_v3  ;;  %1877 = vmatpush.msk.msra.mxu0 %vm1259_vm14, %v2514_v3 }
0x1a30   :  { %1388 = vmatpush.msra.mxu2 %v2500_v57  ;;  %1436 = vmatpush.msra.mxu3 %v2500_v57 }
0x1a31   :  { %1857 = vmatmul.msk.f32.vlgmr.msra.gmra.mxu2 %vm1366_vm3, %v1855_v0  ;;  %1592 = vmatpush.msra.mxu1 %v2500_v57 }
0x1a32   :  { %1862 = vmatpush.msk.msrb.mxu2 %vm1259_vm14, %v2514_v3  ;;  %1865 = vmatpush.msk.msrb.mxu3 %vm1259_vm14, %v2514_v3 }
0x1a33   :  { %1741 = vmatpush.msra.mxu0 %v2500_v57 }
0x1a34   :  { %1488 = vmatpush.msrb.mxu2 %v2500_v57  ;;  %1540 = vmatpush.msrb.mxu3 %v2500_v57 }
0x1a36   :  { %1871 = vmatpush.msk.msra.mxu2 %vm1259_vm14, %v2514_v3 }
0x1a38   :  { %1639 = vmatpush.msra.mxu2 %v2500_v57 }
0x1a78   :  { %v1246_v5 = vpop.permute.xlu0 %1245 }
0x1a79   :  { %v1248_v7 = vadd.f32 %v1246_v5, %v2321_v51 }
0x1a7b   :  { %1979 = vtanh.f32 %v1248_v7 }
0x1a81   :  { %v1980_v2 = vpop.eup %1979 }
0x1a82   :  { %1252 = vrot.lane.b32.xlu1 %v1980_v2, %s2054_s2 }
0x1ab4   :  { %v1390_v25 = vpop.f32.mrf.mxu2 }
0x1af4   :  { %v1253_v52 = vpop.permute.xlu1 %1252 }
0x1af5   :  { %v1255_v11 = vmul.f32 %v1253_v52, %v1250_v8  ;;  %v1995_v52 = vld [vmem:[%s2697_s6] ss:$0 sm:$0xff] }
0x1af7   :  { %v1258_v18 = vadd.f32 %v1257_v58, %v1255_v11  ;;  %v674_v58 = vadd.f32 %v1995_v52, %v2419_v10 }
0x1af9   :  { %v1268_v51 = vsel %vm1259_vm14, %v1258_v18, %v2463_v23  ;;  %v677_v11 = vrot.slane %v674_v58, 2  ;;  %v715_v58 = vrot.slane %v2397_v61, 6  ;;  %v1271_v61 = vsel %vm1259_vm14, %v2427_v37, %v2409_v4 }
0x1afa   :  { %v1269_v13 = vsel %vm1261_vm15, %v1268_v51, %v2451_v48 }
0x1afb   :  { %v1270_v19 = vsel %vm1263_vm6, %v1269_v13, %v2439_v12 }
0x1afc   :  { %v1282_v22 = vsel %vm178_vm5, %v1277_v16, %v1270_v19 }
0x1afd   :  { %1285 = vst.msk [vmem:[%s2704_s13] sm:$0xff] %vm1284_vm4, %v1282_v22  ;;  %1851 = vmatmul.msk.f32.vlgmr.msrb.gmra.mxu0 %vm1284_vm4, %v1282_v22  ;;  %v679_v22 = vadd.f32 %v677_v11, %v2332_v6 }
0x1b7a   :  { %v1322_v48 = vpop.f32.mrf.mxu0 }
0x1b7b   :  { %v2561_v15 = vadd.f32 %v2558_v14, %v1322_v48  ;;  %v1835_v48 = vmul.f32 -1.442695, %v679_v22 }
0x1b7d   :  { %v2564_v12 = vadd.f32 %v1390_v25, %v2561_v15  ;;  %1981 = vpow2.f32 %v1835_v48 }
0x1b7f   :  { %v1395_v23 = vsel %vm1394_vm0, %v2564_v12, -inf }
0x1b80   :  { %1396 = vmax.xlane.f32.xlu0 %v1395_v23 }
0x1b83   :  { %v1982_v25 = vpop.eup %1981 }
0x1b84   :  { %v683_v23 = vadd.f32 1.0, %v1982_v25 }
0x1b86   :  { %1983 = vrcp.f32 %v683_v23 }
0x1bf3   :  { %v1397_v20 = vpop.xlane.xlu0 %1396 }
0x1bf4   :  { %vm1398_vm7 = vcmp.ge.f32.partialorder %v2564_v12, %v1397_v20 }
0x1bf5   :  { %v1399_v24 = vsel %vm1398_vm7, %v2508_v62, 2147483647 }
0x1bf6   :  { %v1400_v26 = vsel %vm1394_vm0, %v1399_v24, 2147483647 }
0x1bf7   :  { %v1402_v27 = vshra.s32 %v1400_v26, 16  ;;  %v1401_v28 = vand.u32 65535, %v1400_v26 }
0x1bf9   :  { %v1404_v21 = vcvt.s32.f32 %v1402_v27  ;;  %v1403_v30 = vcvt.s32.f32 %v1401_v28  ;;  %v1984_v27 = vpop.eup %1983 }
0x1bfb   :  { %1405 = vmin.xlane.f32.xlu1 %v1404_v21 }
0x1c6e   :  { %v1406_v29 = vpop.xlane.xlu1 %1405 }
0x1c6f   :  { %vm1407_vm8 = vcmp.eq.f32.partialorder %v1404_v21, %v1406_v29  ;;  %v1412_v43 = vcvt.f32.s32 %v1406_v29  ;;  %v685_v21 = vmul.f32 %v1984_v27, %v683_v23 }
0x1c70   :  { %v1408_v31 = vsel %vm1407_vm8, %v1403_v30, inf  ;;  %vm690_vm8 = vweird.f32 %v1984_v27 }
0x1c71   :  { %1409 = vmin.xlane.f32.xlu2 %v1408_v31  ;;  %v1413_v42 = vshll.u32 %v1412_v43, 16  ;;  %v686_v28 = vsub.f32 1.0, %v685_v21  ;;  %v695_v31 = vand.u32 2147483648, %v683_v23  ;;  %v693_v43 = vand.u32 2147483647, %v683_v23 }
0x1c73   :  { %v687_v29 = vmul.f32 %v1984_v27, %v686_v28 }
0x1c75   :  { %v688_v30 = vadd.f32 %v1984_v27, %v687_v29 }
0x1ce4   :  { %v1410_v32 = vpop.xlane.xlu2 %1409 }
0x1ce5   :  { %v1411_v33 = vcvt.f32.s32 %v1410_v32 }
0x1ce7   :  { %v1414_v34 = vadd.s32 %v1413_v42, %v1411_v33  ;;  %v696_v33 = vor.u32 1.1754944e-38, %v695_v31 }
0x1ce9   :  { %vm1415_vm9 = vcmp.eq.s32.totalorder %v2508_v62, %v1414_v34 }
0x1cea   :  { %v1858_v35 = vsel %vm1415_vm9, 1.0, %v2052_v9  ;;  %vm689_vm9 = vweird.f32 %v683_v23 }
0x1ceb   :  { %1860 = vmatmul.msk.f32.vlgmr.msra.gmra.mxu3 %vm1366_vm3, %v1858_v35 }
0x1cec   :  { %1874 = vmatpush.msk.msra.mxu3 %vm1259_vm14, %v2514_v3 }
0x1cee   :  { %1690 = vmatpush.msra.mxu3 %v2500_v57 }
0x1d6e   :  { %v1438_v36 = vpop.f32.mrf.mxu3 }
0x1d6f   :  { %v1442_v38 = vrot.slane %v1438_v36, 6 }
0x1d71   :  { %v2578_v39 = vadd.f32 %v1442_v38, %v2561_v15 }
0x1d73   :  { %v1446_v17 = vsel %vm1445_vm10, %v2578_v39, -inf }
0x1d74   :  { %1447 = vmax.xlane.f32.xlu2 %v1446_v17 }
0x1de7   :  { %v1448_v53 = vpop.xlane.xlu2 %1447 }
0x1de8   :  { %vm1449_vm11 = vcmp.ge.f32.partialorder %v2578_v39, %v1448_v53 }
0x1de9   :  { %v1450_v45 = vsel %vm1449_vm11, %v2508_v62, 2147483647  ;;  %vm691_vm11 = vmor %vm689_vm9, %vm690_vm8 }
0x1dea   :  { %v1451_v46 = vsel %vm1445_vm10, %v1450_v45, 2147483647  ;;  %v692_v32 = vsel %vm691_vm11, %v1984_v27, %v688_v30 }
0x1deb   :  { %v1453_v49 = vshra.s32 %v1451_v46, 16  ;;  %v1452_v55 = vand.u32 65535, %v1451_v46 }
0x1ded   :  { %v1455_v50 = vcvt.s32.f32 %v1453_v49  ;;  %v1454_v41 = vcvt.s32.f32 %v1452_v55 }
0x1def   :  { %1456 = vmin.xlane.f32.xlu0 %v1455_v50 }
0x1e62   :  { %v1457_v40 = vpop.xlane.xlu0 %1456 }
0x1e63   :  { %vm1458_vm12 = vcmp.eq.f32.partialorder %v1455_v50, %v1457_v40  ;;  %v1463_v47 = vcvt.f32.s32 %v1457_v40 }
0x1e64   :  { %v1459_v56 = vsel %vm1458_vm12, %v1454_v41, inf  ;;  %vm694_vm12 = vcmp.eq.f32.partialorder %v693_v43, 8.507059e+37 }
0x1e65   :  { %1460 = vmin.xlane.f32.xlu1 %v1459_v56  ;;  %v1464_v59 = vshll.u32 %v1463_v47, 16  ;;  %v697_v34 = vsel %vm694_vm12, %v696_v33, %v692_v32 }
0x1e66   :  { %v709_v52 = vsub.f32 1.0, %v697_v34 }
0x1ed8   :  { %v1461_v57 = vpop.xlane.xlu1 %1460 }
0x1ed9   :  { %v1462_v60 = vcvt.f32.s32 %v1461_v57 }
0x1edb   :  { %v1465_v1 = vadd.s32 %v1464_v59, %v1462_v60 }
0x1edd   :  { %vm1466_vm13 = vcmp.eq.s32.totalorder %v2508_v62, %v1465_v1 }
0x1ede   :  { %v1861_v3 = vsel %vm1466_vm13, 1.0, %v2052_v9 }
0x1edf   :  { %v1470_v0 = vrot.slane %v1861_v3, 2 }
0x1ee1   :  { %1863 = vmatmul.msk.f32.vlgmr.msrb.gmra.mxu2 %vm1366_vm3, %v1470_v0 }
0x1f64   :  { %v1490_v5 = vpop.f32.mrf.mxu2 }
0x1f65   :  { %v1494_v7 = vrot.slane %v1490_v5, 4 }
0x1f67   :  { %v2589_v2 = vadd.f32 %v1494_v7, %v2561_v15 }
0x1f69   :  { %v1498_v8 = vsel %vm1497_vm1, %v2589_v2, -inf }
0x1f6a   :  { %1499 = vmax.xlane.f32.xlu2 %v1498_v8 }
0x1f82   :  { %699 = vrot.lane.b32.xlu2 %v677_v11, %s2053_s18 }
0x1fdd   :  { %v1500_v18 = vpop.xlane.xlu2 %1499 }
0x1fde   :  { %vm1501_vm2 = vcmp.ge.f32.partialorder %v2589_v2, %v1500_v18  ;;  %v717_v18 = vmul.f32 %v715_v58, %v697_v34 }
0x1fdf   :  { %v1502_v51 = vsel %vm1501_vm2, %v2508_v62, 2147483647  ;;  %vm1549_vm2 = vcmask 72710  }
0x1fe0   :  { %v1503_v13 = vsel %vm1497_vm1, %v1502_v51, 2147483647 }
0x1fe1   :  { %v1505_v16 = vshra.s32 %v1503_v13, 16  ;;  %v1504_v10 = vand.u32 65535, %v1503_v13 }
0x1fe3   :  { %v1507_v19 = vcvt.s32.f32 %v1505_v16  ;;  %v1506_v24 = vcvt.s32.f32 %v1504_v10 }
0x1fe5   :  { %1508 = vmin.xlane.f32.xlu0 %v1507_v19  ;;  %v700_v42 = vpop.permute.xlu2 %699 }
0x1fe6   :  { %v702_v35 = vmul.f32 %v700_v42, %v697_v34 }
0x2058   :  { %v1509_v20 = vpop.xlane.xlu0 %1508 }
0x2059   :  { %vm1510_vm7 = vcmp.eq.f32.partialorder %v1507_v19, %v1509_v20  ;;  %v1515_v36 = vcvt.f32.s32 %v1509_v20 }
0x205a   :  { %v1511_v26 = vsel %vm1510_vm7, %v1506_v24, inf }
0x205b   :  { %1512 = vmin.xlane.f32.xlu1 %v1511_v26  ;;  %v1516_v17 = vshll.u32 %v1515_v36, 16 }
0x2074   :  { %704 = vrot.lane.b32.xlu1 %v702_v35, %s2053_s18 }
0x20ce   :  { %v1513_v38 = vpop.xlane.xlu1 %1512 }
0x20cf   :  { %v1514_v53 = vcvt.f32.s32 %v1513_v38 }
0x20d1   :  { %v1517_v45 = vadd.s32 %v1516_v17, %v1514_v53 }
0x20d3   :  { %vm1518_vm13 = vcmp.eq.s32.totalorder %v2508_v62, %v1517_v45 }
0x20d4   :  { %v1864_v46 = vsel %vm1518_vm13, 1.0, %v2052_v9 }
0x20d5   :  { %v1522_v49 = vrot.slane %v1864_v46, 4 }
0x20d7   :  { %1866 = vmatmul.msk.f32.vlgmr.msrb.gmra.mxu3 %vm1366_vm3, %v1522_v49 }
0x20e6   :  { %v705_v1 = vpop.permute.xlu1 %704 }
0x20e7   :  { %v707_v3 = vadd.f32 %v705_v1, %v2332_v6 }
0x20e9   :  { %1985 = vtanh.f32 %v707_v3 }
0x20ef   :  { %v1986_v0 = vpop.eup %1985 }
0x215a   :  { %v1542_v50 = vpop.f32.mrf.mxu3 }
0x215b   :  { %v1546_v55 = vrot.slane %v1542_v50, 2 }
0x215d   :  { %v2607_v40 = vadd.f32 %v1546_v55, %v2561_v15 }
0x215f   :  { %v1550_v41 = vsel %vm1549_vm2, %v2607_v40, -inf }
0x2160   :  { %1551 = vmax.xlane.f32.xlu0 %v1550_v41 }
0x21d3   :  { %v1552_v56 = vpop.xlane.xlu0 %1551 }
0x21d4   :  { %vm1553_vm7 = vcmp.ge.f32.partialorder %v2607_v40, %v1552_v56 }
0x21d5   :  { %v1554_v47 = vsel %vm1553_vm7, %v2508_v62, 2147483647 }
0x21d6   :  { %v1555_v57 = vsel %vm1549_vm2, %v1554_v47, 2147483647 }
0x21d7   :  { %v1557_v59 = vshra.s32 %v1555_v57, 16  ;;  %v1556_v15 = vand.u32 65535, %v1555_v57 }
0x21d9   :  { %v1559_v60 = vcvt.s32.f32 %v1557_v59  ;;  %v1558_v7 = vcvt.s32.f32 %v1556_v15 }
0x21db   :  { %1560 = vmin.xlane.f32.xlu0 %v1559_v60 }
0x21ef   :  { %711 = vrot.lane.b32.xlu0 %v1986_v0, %s2054_s2 }
0x224e   :  { %v1561_v5 = vpop.xlane.xlu0 %1560 }
0x224f   :  { %vm1562_vm8 = vcmp.eq.f32.partialorder %v1559_v60, %v1561_v5  ;;  %v1567_v16 = vcvt.f32.s32 %v1561_v5 }
0x2250   :  { %v1563_v8 = vsel %vm1562_vm8, %v1558_v7, inf }
0x2251   :  { %1564 = vmin.xlane.f32.xlu2 %v1563_v8  ;;  %v1568_v22 = vshll.u32 %v1567_v16, 16 }
0x2261   :  { %v712_v11 = vpop.permute.xlu0 %711 }
0x2262   :  { %v714_v51 = vmul.f32 %v712_v11, %v709_v52 }
0x2264   :  { %v718_v13 = vadd.f32 %v717_v18, %v714_v51 }
0x2266   :  { %v1267_v6 = vsel %vm1263_vm6, %v2405_v63, %v718_v13  ;;  %v1272_v63 = vsel %vm1261_vm15, %v1271_v61, %v2369_v54  ;;  %v1750_v13 = vsel %vm1259_vm14, %v2564_v12, %v2578_v39 }
0x2267   :  { %1278 = vrot.lane.b32.xlu1 %v1267_v6, %s2054_s2  ;;  %v1273_v24 = vsel %vm1263_vm6, %v1272_v63, %v2340_v44  ;;  %v1751_v6 = vsel %vm1261_vm15, %v1750_v13, %v2589_v2 }
0x2268   :  { %v1752_v16 = vsel %vm1263_vm6, %v1751_v6, %v2607_v40 }
0x22c4   :  { %v1565_v19 = vpop.xlane.xlu2 %1564 }
0x22c5   :  { %v1566_v48 = vcvt.f32.s32 %v1565_v19 }
0x22c7   :  { %v1569_v25 = vadd.s32 %v1568_v22, %v1566_v48 }
0x22c9   :  { %vm1570_vm9 = vcmp.eq.s32.totalorder %v2508_v62, %v1569_v25 }
0x22ca   :  { %v1867_v23 = vsel %vm1570_vm9, 1.0, %v2052_v9 }
0x22cb   :  { %v1574_v10 = vrot.slane %v1867_v23, 6 }
0x22cd   :  { %1869 = vmatmul.msk.f32.vlgmr.msra.gmra.mxu1 %vm1366_vm3, %v1574_v10 }
0x22d9   :  { %v1279_v20 = vpop.permute.xlu1 %1278 }
0x22da   :  { %v1283_v26 = vsel %vm178_vm5, %v1279_v20, %v1273_v24 }
0x22db   :  { %1286 = vst.msk [vmem:[%s2704_s13 + $0x8] sm:$0xff] %vm1284_vm4, %v1283_v26  ;;  %1852 = vmatmul.msk.f32.gmra.mxu0 %vm1284_vm4, %v1283_v26 }
0x234a   :  { %v1594_v4 = vpop.f32.mrf.mxu1 }
0x2358   :  { %v1325_v27 = vpop.f32.mrf.mxu0 }
0x2359   :  { %v2635_v21 = vadd.f32 %v2558_v14, %v1325_v27 }
0x235b   :  { %v2638_v54 = vadd.f32 %v1594_v4, %v2635_v21 }
0x235d   :  { %v1598_v44 = vsel %vm1394_vm0, %v2638_v54, -inf }
0x235e   :  { %1599 = vmax.xlane.f32.xlu1 %v1598_v44 }
0x23d1   :  { %v1600_v37 = vpop.xlane.xlu1 %1599 }
0x23d2   :  { %vm1601_vm5 = vcmp.ge.f32.partialorder %v2638_v54, %v1600_v37 }
0x23d3   :  { %v1602_v28 = vsel %vm1601_vm5, %v2508_v62, 2147483647 }
0x23d4   :  { %v1603_v29 = vsel %vm1394_vm0, %v1602_v28, 2147483647 }
0x23d5   :  { %v1605_v30 = vshra.s32 %v1603_v29, 16  ;;  %v1604_v14 = vand.u32 65535, %v1603_v29 }
0x23d7   :  { %v1607_v31 = vcvt.s32.f32 %v1605_v30  ;;  %v1606_v32 = vcvt.s32.f32 %v1604_v14 }
0x23d9   :  { %1608 = vmin.xlane.f32.xlu0 %v1607_v31 }
0x244c   :  { %v1609_v43 = vpop.xlane.xlu0 %1608 }
0x244d   :  { %vm1610_vm4 = vcmp.eq.f32.partialorder %v1607_v31, %v1609_v43  ;;  %v1615_v33 = vcvt.f32.s32 %v1609_v43 }
0x244e   :  { %v1611_v42 = vsel %vm1610_vm4, %v1606_v32, inf }
0x244f   :  { %1612 = vmin.xlane.f32.xlu2 %v1611_v42  ;;  %v1616_v35 = vshll.u32 %v1615_v33, 16 }
0x24c2   :  { %v1613_v34 = vpop.xlane.xlu2 %1612 }
0x24c3   :  { %v1614_v36 = vcvt.f32.s32 %v1613_v34 }
0x24c5   :  { %v1617_v38 = vadd.s32 %v1616_v35, %v1614_v36 }
0x24c7   :  { %vm1618_vm11 = vcmp.eq.s32.totalorder %v2508_v62, %v1617_v38 }
0x24c8   :  { %v1870_v17 = vsel %vm1618_vm11, 1.0, %v2052_v9 }
0x24c9   :  { %1872 = vmatmul.msk.f32.vlgmr.msra.gmra.mxu2 %vm1366_vm3, %v1870_v17 }
0x254c   :  { %v1641_v53 = vpop.f32.mrf.mxu2 }
0x254d   :  { %v1645_v45 = vrot.slane %v1641_v53, 6 }
0x254f   :  { %v2649_v46 = vadd.f32 %v1645_v45, %v2635_v21 }
0x2551   :  { %v1648_v49 = vsel %vm1445_vm10, %v2649_v46, -inf }
0x2552   :  { %1649 = vmax.xlane.f32.xlu2 %v1648_v49  ;;  %v1753_v49 = vsel %vm1259_vm14, %v2638_v54, %v2649_v46 }
0x25c5   :  { %v1650_v50 = vpop.xlane.xlu2 %1649 }
0x25c6   :  { %vm1651_vm0 = vcmp.ge.f32.partialorder %v2649_v46, %v1650_v50 }
0x25c7   :  { %v1652_v55 = vsel %vm1651_vm0, %v2508_v62, 2147483647 }
0x25c8   :  { %v1653_v41 = vsel %vm1445_vm10, %v1652_v55, 2147483647  ;;  %vm1756_vm10 = vcmask 72704  }
0x25c9   :  { %v1655_v56 = vshra.s32 %v1653_v41, 16  ;;  %v1654_v57 = vand.u32 65535, %v1653_v41  ;;  %v1757_v19 = vsel %vm1756_vm10, %v1752_v16, -inf }
0x25cb   :  { %v1657_v47 = vcvt.s32.f32 %v1655_v56  ;;  %v1656_v60 = vcvt.s32.f32 %v1654_v57 }
0x25cd   :  { %1658 = vmin.xlane.f32.xlu1 %v1657_v47 }
0x2640   :  { %v1659_v59 = vpop.xlane.xlu1 %1658 }
0x2641   :  { %vm1660_vm12 = vcmp.eq.f32.partialorder %v1657_v47, %v1659_v59  ;;  %v1665_v3 = vcvt.f32.s32 %v1659_v59 }
0x2642   :  { %v1661_v1 = vsel %vm1660_vm12, %v1656_v60, inf }
0x2643   :  { %1662 = vmin.xlane.f32.xlu0 %v1661_v1  ;;  %v1666_v15 = vshll.u32 %v1665_v3, 16 }
0x26b6   :  { %v1663_v0 = vpop.xlane.xlu0 %1662 }
0x26b7   :  { %v1664_v5 = vcvt.f32.s32 %v1663_v0 }
0x26b9   :  { %v1667_v7 = vadd.s32 %v1666_v15, %v1664_v5 }
0x26bb   :  { %vm1668_vm13 = vcmp.eq.s32.totalorder %v2508_v62, %v1667_v7 }
0x26bc   :  { %v1873_v8 = vsel %vm1668_vm13, 1.0, %v2052_v9 }
0x26bd   :  { %v1672_v52 = vrot.slane %v1873_v8, 2 }
0x26bf   :  { %1875 = vmatmul.msk.f32.vlgmr.msra.gmra.mxu3 %vm1366_vm3, %v1672_v52 }
0x2742   :  { %v1692_v58 = vpop.f32.mrf.mxu3 }
0x2743   :  { %v1696_v11 = vrot.slane %v1692_v58, 4 }
0x2745   :  { %v1698_v18 = vadd.f32 %v1696_v11, %v2635_v21 }
0x2747   :  { %v1699_v51 = vsel %vm1497_vm1, %v1698_v18, -inf  ;;  %v1754_v50 = vsel %vm1261_vm15, %v1753_v49, %v1698_v18 }
0x2748   :  { %1700 = vmax.xlane.f32.xlu2 %v1699_v51 }
0x2750   :  { %1758 = vmax.xlane.f32.xlu2 %v1757_v19 }
0x27bb   :  { %v1701_v22 = vpop.xlane.xlu2 %1700 }
0x27bc   :  { %vm1702_vm2 = vcmp.ge.f32.partialorder %v1698_v18, %v1701_v22 }
0x27bd   :  { %v1703_v48 = vsel %vm1702_vm2, %v2508_v62, 2147483647 }
0x27be   :  { %v1704_v25 = vsel %vm1497_vm1, %v1703_v48, 2147483647 }
0x27bf   :  { %v1706_v23 = vshra.s32 %v1704_v25, 16  ;;  %v1705_v61 = vand.u32 65535, %v1704_v25 }
0x27c1   :  { %v1708_v10 = vcvt.s32.f32 %v1706_v23  ;;  %v1707_v20 = vcvt.s32.f32 %v1705_v61 }
0x27c3   :  { %1709 = vmin.xlane.f32.xlu1 %v1708_v10  ;;  %v1759_v12 = vpop.xlane.xlu2 %1758 }
0x27c4   :  { %v1763_v39 = vsub.f32 %v1752_v16, %v1759_v12 }
0x27c6   :  { %v1765_v2 = vmul.f32 1.442695, %v1763_v39 }
0x27c8   :  { %1987 = vpow2.f32 %v1765_v2 }
0x27ce   :  { %v1988_v24 = vpop.eup %1987 }
0x27cf   :  { %v1769_v26 = vsel %vm1756_vm10, %v1988_v24, 0.0 }
0x2836   :  { %v1710_v63 = vpop.xlane.xlu1 %1709 }
0x2837   :  { %vm1711_vm7 = vcmp.eq.f32.partialorder %v1708_v10, %v1710_v63  ;;  %v1716_v27 = vcvt.f32.s32 %v1710_v63 }
0x2838   :  { %v1712_v40 = vsel %vm1711_vm7, %v1707_v20, inf }
0x2839   :  { %1713 = vmin.xlane.f32.xlu0 %v1712_v40  ;;  %v1717_v44 = vshll.u32 %v1716_v27, 16 }
0x2841   :  { %1770 = vadd.xlane.f32.xlu0 %v1769_v26 }
0x28ac   :  { %v1714_v4 = vpop.xlane.xlu0 %1713 }
0x28ad   :  { %v1715_v37 = vcvt.f32.s32 %v1714_v4 }
0x28af   :  { %v1718_v28 = vadd.s32 %v1717_v44, %v1715_v37 }
0x28b1   :  { %vm1719_vm1 = vcmp.eq.s32.totalorder %v2508_v62, %v1718_v28 }
0x28b2   :  { %v1876_v29 = vsel %vm1719_vm1, 1.0, %v2052_v9 }
0x28b3   :  { %v1723_v30 = vrot.slane %v1876_v29, 4 }
0x28b4   :  { %v1771_v31 = vpop.xlane.xlu0 %1770 }
0x28b5   :  { %1989 = vrcp.f32 %v1771_v31  ;;  %1878 = vmatmul.msk.f32.vlgmr.msra.gmra.mxu0 %vm1366_vm3, %v1723_v30  ;;  %v1786_v42 = vand.u32 2147483648, %v1771_v31  ;;  %v1784_v34 = vand.u32 2147483647, %v1771_v31  ;;  %vm1780_vm9 = vweird.f32 %v1771_v31 }
0x28b7   :  { %v1787_v36 = vor.u32 1.1754944e-38, %v1786_v42  ;;  %vm1785_vm4 = vcmp.eq.f32.partialorder %v1784_v34, 8.507059e+37 }
0x28bb   :  { %v1990_v14 = vpop.eup %1989 }
0x28bc   :  { %v1776_v43 = vmul.f32 %v1990_v14, %v1771_v31  ;;  %vm1781_vm8 = vweird.f32 %v1990_v14 }
0x28bd   :  { %vm1782_vm5 = vmor %vm1780_vm9, %vm1781_vm8 }
0x28be   :  { %v1777_v32 = vsub.f32 1.0, %v1776_v43 }
0x28c0   :  { %v1778_v33 = vmul.f32 %v1990_v14, %v1777_v32 }
0x28c2   :  { %v1779_v35 = vadd.f32 %v1990_v14, %v1778_v33 }
0x28c4   :  { %v1783_v38 = vsel %vm1782_vm5, %v1990_v14, %v1779_v35 }
0x28c5   :  { %v1788_v62 = vsel %vm1785_vm4, %v1787_v36, %v1783_v38 }
0x28c6   :  { %v1789_v9 = vmul.f32 %v1988_v24, %v1788_v62 }
0x28c8   :  { %1805 = vst.msk [vmem:[%s2705_s14] sm:$0xff] %vm1756_vm10, %v1789_v9 }
0x2932   :  { %v1743_v17 = vpop.f32.mrf.mxu0 }
0x2933   :  { %v1747_v53 = vrot.slane %v1743_v17, 2 }
0x2935   :  { %v1749_v45 = vadd.f32 %v1747_v53, %v2635_v21 }
0x2937   :  { %v1755_v55 = vsel %vm1263_vm6, %v1754_v50, %v1749_v45 }
0x2938   :  { %v1760_v41 = vsel %vm1756_vm10, %v1755_v55, -inf }
0x2939   :  { %1761 = vmax.xlane.f32.xlu1 %v1760_v41 }
0x29ac   :  { %v1762_v56 = vpop.xlane.xlu1 %1761 }
0x29ad   :  { %v1764_v47 = vsub.f32 %v1755_v55, %v1762_v56 }
0x29af   :  { %v1767_v57 = vmul.f32 1.442695, %v1764_v47 }
0x29b1   :  { %1991 = vpow2.f32 %v1767_v57 }
0x29b7   :  { %v1992_v59 = vpop.eup %1991 }
0x29b8   :  { %v1772_v60 = vsel %vm1756_vm10, %v1992_v59, 0.0 }
0x29b9   :  { %1773 = vadd.xlane.f32.xlu2 %v1772_v60 }
0x2a2c   :  { %v1774_v21 = vpop.xlane.xlu2 %1773 }
0x2a2d   :  { %1993 = vrcp.f32 %v1774_v21  ;;  %v1801_v46 = vand.u32 2147483648, %v1774_v21  ;;  %v1799_v15 = vand.u32 2147483647, %v1774_v21  ;;  %vm1795_vm15 = vweird.f32 %v1774_v21 }
0x2a2f   :  { %v1802_v7 = vor.u32 1.1754944e-38, %v1801_v46  ;;  %vm1800_vm3 = vcmp.eq.f32.partialorder %v1799_v15, 8.507059e+37 }
0x2a33   :  { %v1994_v1 = vpop.eup %1993 }
0x2a34   :  { %v1791_v3 = vmul.f32 %v1994_v1, %v1774_v21  ;;  %vm1796_vm14 = vweird.f32 %v1994_v1 }
0x2a35   :  { %vm1797_vm6 = vmor %vm1795_vm15, %vm1796_vm14 }
0x2a36   :  { %v1792_v54 = vsub.f32 1.0, %v1791_v3 }
0x2a38   :  { %v1793_v0 = vmul.f32 %v1994_v1, %v1792_v54 }
0x2a3a   :  { %v1794_v5 = vadd.f32 %v1994_v1, %v1793_v0 }
0x2a3c   :  { %v1798_v8 = vsel %vm1797_vm6, %v1994_v1, %v1794_v5 }
0x2a3d   :  { %v1803_v52 = vsel %vm1800_vm3, %v1802_v7, %v1798_v8 }
0x2a3e   :  { %v1804_v58 = vmul.f32 %v1992_v59, %v1803_v52 }
0x2a40   :  { %1806 = vst.msk [vmem:[%s2705_s14 + $0x8] sm:$0xff] %vm1756_vm10, %v1804_v58 }
0x2a41   :  { %1815 = vsyncpa [#allocation3], 1 }
0x2a42   :  { %1816 = vsyncpa [#allocation5], 1 }

</bundles_post_ra>
